<compile_context>
chip_gen: v7x
topology: tpu7x:2x2x1
jax: 0.10.0
libtpu: 0.0.40
codegen_flags: <defaults>
</compile_context>

<pallas_src>
import functools

import jax
import jax.numpy as jnp
from jax.experimental import pallas as pl
from jax.experimental.pallas import tpu as pltpu

LAYER_NORM_EPS = 1e-7  # spec overrides HF default (config.layer_norm_eps = 1e-07)


# ----------------------------------------------------------------------------
# In-kernel helpers
# ----------------------------------------------------------------------------
def _layernorm(x, gamma, beta):
    # x: (M, H) fp32 ; gamma/beta: (1, H) fp32
    mu = jnp.mean(x, axis=-1, keepdims=True)
    var = jnp.mean((x - mu) ** 2, axis=-1, keepdims=True)
    return (x - mu) * jax.lax.rsqrt(var + LAYER_NORM_EPS) * gamma + beta


# ----------------------------------------------------------------------------
# One kernel for the whole encoder stack + pooler + classifier.
# Grid = (batch blocks [parallel], layers [arbitrary]); residual stream is a
# VMEM scratch carried across the layer axis.
# ----------------------------------------------------------------------------
def bert_stack_kernel(x_ref, mask_ref, emb_g_ref, emb_b_ref,
                      wqkv_ref, bqkv_ref, wo_ref, bo_ref,
                      ln1_g_ref, ln1_b_ref, w1_ref, b1_ref,
                      w2_ref, b2_ref, ln2_g_ref, ln2_b_ref,
                      wp_ref, bp_ref, wc_ref, bc_ref,
                      logits_ref, resid_ref, *, num_heads):
    layer = pl.program_id(1)
    num_layers = pl.num_programs(1)

    Bt, S, H = resid_ref.shape
    M = Bt * S
    dh = H // num_heads

    @pl.when(layer == 0)
    def _():
        # Seed the resident residual stream with the embedding LayerNorm
        # (fused: no separate full-activation HBM round trip).
        x0 = x_ref[...].reshape(M, H)
        resid_ref[...] = _layernorm(x0, emb_g_ref[...], emb_b_ref[...]).reshape(Bt, S, H)
        logits_ref[...] = jnp.zeros_like(logits_ref)

    x2d = resid_ref[...].reshape(M, H)          # (M, H) fp32 residual stream
    xb = x2d.astype(jnp.bfloat16)

    # --- fused QKV projection: one MXU pass with N = 3H ---
    qkv = jnp.dot(xb, wqkv_ref[...], preferred_element_type=jnp.float32) + bqkv_ref[...]
    # 1/sqrt(dh) is already folded into the Q slice of wqkv/bqkv (weight prep).
    q2d = qkv[:, :H].astype(jnp.bfloat16)
    k2d = qkv[:, H:2 * H].astype(jnp.bfloat16)
    v2d = qkv[:, 2 * H:].astype(jnp.bfloat16)

    neg = mask_ref[...]                         # (Bt, 1, S) fp32 additive mask

    # --- head-fused attention, per batch row (no cross-row token mixing) ---
    ctx_rows = []
    for bi in range(Bt):                        # static, small unroll
        qh = q2d[bi * S:(bi + 1) * S, :].reshape(S, num_heads, dh)
        kh = k2d[bi * S:(bi + 1) * S, :].reshape(S, num_heads, dh)
        vh = v2d[bi * S:(bi + 1) * S, :].reshape(S, num_heads, dh)
        s = jnp.einsum('qhd,khd->hqk', qh, kh,
                       preferred_element_type=jnp.float32)     # (nH, S, S) fp32
        s = s + neg[bi][None, :, :]                            # mask in fp32
        s = s - jnp.max(s, axis=-1, keepdims=True)
        p = jnp.exp(s)
        p = p * pl.reciprocal(jnp.sum(p, axis=-1, keepdims=True), approx=True)
        ctx = jnp.einsum('hqk,khd->qhd', p.astype(jnp.bfloat16), vh,
                         preferred_element_type=jnp.float32)   # (S, nH, dh)
        ctx_rows.append(ctx.reshape(S, H))
    ctx2d = jnp.concatenate(ctx_rows, axis=0) if Bt > 1 else ctx_rows[0]

    attn = jnp.dot(ctx2d.astype(jnp.bfloat16), wo_ref[...],
                   preferred_element_type=jnp.float32) + bo_ref[...]

    # --- residual + LayerNorm 1 (fp32) ---
    x1 = _layernorm(x2d + attn, ln1_g_ref[...], ln1_b_ref[...])

    # --- feed forward (gelu, tanh approximation -> EUP) ---
    inter = jnp.dot(x1.astype(jnp.bfloat16), w1_ref[...],
                    preferred_element_type=jnp.float32) + b1_ref[...]
    inter = jax.nn.gelu(inter, approximate=True)
    ffn = jnp.dot(inter.astype(jnp.bfloat16), w2_ref[...],
                  preferred_element_type=jnp.float32) + b2_ref[...]

    # --- residual + LayerNorm 2 (fp32) -> back into the resident stream ---
    out2d = _layernorm(x1 + ffn, ln2_g_ref[...], ln2_b_ref[...])
    resid_ref[...] = out2d.reshape(Bt, S, H)

    # --- fused pooler + dropout(identity, eval) + classifier on last layer ---
    @pl.when(layer == num_layers - 1)
    def _():
        cls = resid_ref[:, 0, :].astype(jnp.bfloat16)           # (Bt, H) CLS rows
        pooled = jnp.tanh(jnp.dot(cls, wp_ref[...],
                                  preferred_element_type=jnp.float32) + bp_ref[...])
        # nn.Dropout(p=0.1) -> identity at inference time.
        logits_ref[...] = jnp.dot(pooled.astype(jnp.bfloat16), wc_ref[...],
                                  preferred_element_type=jnp.float32) + bc_ref[...]


def bert_encoder_forward(x_emb, mask_add, p, *, num_heads, batch_block=None,
                         vmem_limit_bytes=48 * 1024 * 1024):
    """x_emb: (B, S, H) fp32 embeddings; mask_add: (B, 1, S) fp32 additive mask.
    Returns padded (B, 128) logits (column 0 is the real logit)."""
    B, S, H = x_emb.shape
    L = p['wqkv'].shape[0]
    if batch_block is None:
        # Toy default: whole batch per step.  Tune per generation:
        # bigger on v5e/v6e (128 MiB VMEM), smaller on v7x (64 MiB, 2 TCs).
        batch_block = B
    assert B % batch_block == 0

    def batch_spec(arr):
        n = arr.ndim - 1
        return pl.BlockSpec((batch_block,) + tuple(arr.shape[1:]),
                            lambda b, l, n=n: (b,) + (0,) * n)

    def layer_spec(arr):
        n = arr.ndim - 1
        return pl.BlockSpec((None,) + tuple(arr.shape[1:]),
                            lambda b, l, n=n: (l,) + (0,) * n)

    def const_spec(arr):
        n = arr.ndim
        return pl.BlockSpec(tuple(arr.shape), lambda b, l, n=n: (0,) * n)

    inputs = [
        x_emb, mask_add, p['emb_ln_g'], p['emb_ln_b'],
        p['wqkv'], p['bqkv'], p['wo'], p['bo'],
        p['ln1_g'], p['ln1_b'], p['w1'], p['b1'],
        p['w2'], p['b2'], p['ln2_g'], p['ln2_b'],
        p['pooler_w'], p['pooler_b'], p['cls_w_pad'], p['cls_b_pad'],
    ]
    in_specs = (
        [batch_spec(x_emb), batch_spec(mask_add),
         const_spec(p['emb_ln_g']), const_spec(p['emb_ln_b'])]
        + [layer_spec(p[k]) for k in
           ('wqkv', 'bqkv', 'wo', 'bo', 'ln1_g', 'ln1_b',
            'w1', 'b1', 'w2', 'b2', 'ln2_g', 'ln2_b')]
        + [const_spec(p[k]) for k in
           ('pooler_w', 'pooler_b', 'cls_w_pad', 'cls_b_pad')]
    )

    kernel = functools.partial(bert_stack_kernel, num_heads=num_heads)
    return pl.pallas_call(
        kernel,
        out_shape=jax.ShapeDtypeStruct((B, 128), jnp.float32),
        grid=(B // batch_block, L),
        in_specs=in_specs,
        out_specs=pl.BlockSpec((batch_block, 128), lambda b, l: (b, 0)),
        scratch_shapes=[pltpu.VMEM((batch_block, S, H), jnp.float32)],
        compiler_params=pltpu.CompilerParams(
            dimension_semantics=("parallel", "arbitrary"),
            vmem_limit_bytes=vmem_limit_bytes,
        ),
    )(*inputs)


# ----------------------------------------------------------------------------
# Parameter construction (deterministic, synthetic).
# Matmul weights in bf16 (halves HBM/VMEM traffic, hits the MXU bf16 path);
# biases / LayerNorm params / embeddings stay fp32.  QKV is pre-fused and the
# 1/sqrt(dh) attention scale is folded into the Q slice of the fused weight.
# ----------------------------------------------------------------------------
def init_params(key, *, vocab, max_pos, hidden, inter, num_layers, num_heads):
    dh = hidden // num_heads
    scale = 1.0 / (dh ** 0.5)

    def normal(k, shape, dtype=jnp.bfloat16):
        return (0.02 * jax.random.normal(k, shape, dtype=jnp.float32)).astype(dtype)

    keys = iter(jax.random.split(key, 12))

    wq = normal(next(keys), (num_layers, hidden, hidden), jnp.float32) * scale
    wk = normal(next(keys), (num_layers, hidden, hidden), jnp.float32)
    wv = normal(next(keys), (num_layers, hidden, hidden), jnp.float32)
    wqkv = jnp.concatenate([wq, wk, wv], axis=-1).astype(jnp.bfloat16)  # (L, H, 3H)
    # bq would also be scaled by 1/sqrt(dh); synthetic biases are zero here.
    bqkv = jnp.zeros((num_layers, 1, 3 * hidden), jnp.float32)

    wc = normal(next(keys), (hidden, 1), jnp.float32)
    cls_w_pad = jnp.zeros((hidden, 128), jnp.float32).at[:, :1].set(wc).astype(jnp.bfloat16)

    params = {
        'word_emb': normal(next(keys), (vocab, hidden), jnp.float32),
        'pos_emb': normal(next(keys), (max_pos, hidden), jnp.float32),
        'type_emb': normal(next(keys), (2, hidden), jnp.float32),
        'emb_ln_g': jnp.ones((1, hidden), jnp.float32),
        'emb_ln_b': jnp.zeros((1, hidden), jnp.float32),
        'wqkv': wqkv, 'bqkv': bqkv,
        'wo': normal(next(keys), (num_layers, hidden, hidden)),
        'bo': jnp.zeros((num_layers, 1, hidden), jnp.float32),
        'ln1_g': jnp.ones((num_layers, 1, hidden), jnp.float32),
        'ln1_b': jnp.zeros((num_layers, 1, hidden), jnp.float32),
        'w1': normal(next(keys), (num_layers, hidden, inter)),
        'b1': jnp.zeros((num_layers, 1, inter), jnp.float32),
        'w2': normal(next(keys), (num_layers, inter, hidden)),
        'b2': jnp.zeros((num_layers, 1, hidden), jnp.float32),
        'ln2_g': jnp.ones((num_layers, 1, hidden), jnp.float32),
        'ln2_b': jnp.zeros((num_layers, 1, hidden), jnp.float32),
        'pooler_w': normal(next(keys), (hidden, hidden)),
        'pooler_b': jnp.zeros((1, hidden), jnp.float32),
        'cls_w_pad': cls_w_pad,
        'cls_b_pad': jnp.zeros((1, 128), jnp.float32),
    }
    return params


# ----------------------------------------------------------------------------
# Full forward (mirrors IMDBModel.forward with targets=None)
# ----------------------------------------------------------------------------
def imdb_model_forward(params, ids, mask, token_type_ids, targets=None, *, num_heads):
    B, S = ids.shape
    assert S <= params['pos_emb'].shape[0], "sequence length exceeds max position embeddings"

    # Embedding lookups (gather) stay in plain JAX glue.
    x = (params['word_emb'][ids]
         + params['pos_emb'][:S][None, :, :]
         + params['type_emb'][token_type_ids]).astype(jnp.float32)

    # Additive attention mask, fp32, (B, 1, S).
    mask_add = (1.0 - mask.astype(jnp.float32))[:, None, :] * jnp.float32(-1e9)

    logits_pad = bert_encoder_forward(x, mask_add, params, num_heads=num_heads)
    logits = logits_pad[:, :1]                  # real classifier column

    # targets is None in this synthetic run -> loss None, metrics {}
    return logits, None, {}


# ----------------------------------------------------------------------------
if __name__ == "__main__":
    B, S, H = 2, 8, 32
    NUM_HEADS = 4
    INTER = 64
    NUM_LAYERS = 2
    VOCAB = 100
    MAX_POS = 16

    key = jax.random.PRNGKey(0)
    k_param, k_ids = jax.random.split(key)

    params = init_params(k_param, vocab=VOCAB, max_pos=MAX_POS, hidden=H,
                         inter=INTER, num_layers=NUM_LAYERS, num_heads=NUM_HEADS)

    ids = jax.random.randint(k_ids, (B, S), 0, VOCAB, dtype=jnp.int32)
    mask = jnp.ones((B, S), dtype=jnp.int32)
    token_type_ids = jnp.zeros((B, S), dtype=jnp.int32)

    logits, loss, acc = imdb_model_forward(params, ids, mask, token_type_ids,
                                           num_heads=NUM_HEADS)
    logits = jax.block_until_ready(logits)
    assert logits.shape == (B, 1) and logits.dtype == jnp.float32
    print("KERNEL_OK")
</pallas_src>

<mosaic_0001>
module attributes {stable_mosaic.version = 11 : i64} {
  func.func @bert_stack_kernel(%arg0: i32, %arg1: i32, %arg2: memref<2x8x32xf32, #tpu.memory_space<vmem>>, %arg3: memref<2x1x8xf32, #tpu.memory_space<vmem>>, %arg4: memref<1x32xf32, #tpu.memory_space<vmem>>, %arg5: memref<1x32xf32, #tpu.memory_space<vmem>>, %arg6: memref<1x32x96xbf16, #tpu.memory_space<vmem>>, %arg7: memref<1x1x96xf32, #tpu.memory_space<vmem>>, %arg8: memref<1x32x32xbf16, #tpu.memory_space<vmem>>, %arg9: memref<1x1x32xf32, #tpu.memory_space<vmem>>, %arg10: memref<1x1x32xf32, #tpu.memory_space<vmem>>, %arg11: memref<1x1x32xf32, #tpu.memory_space<vmem>>, %arg12: memref<1x32x64xbf16, #tpu.memory_space<vmem>>, %arg13: memref<1x1x64xf32, #tpu.memory_space<vmem>>, %arg14: memref<1x64x32xbf16, #tpu.memory_space<vmem>>, %arg15: memref<1x1x32xf32, #tpu.memory_space<vmem>>, %arg16: memref<1x1x32xf32, #tpu.memory_space<vmem>>, %arg17: memref<1x1x32xf32, #tpu.memory_space<vmem>>, %arg18: memref<32x32xbf16, #tpu.memory_space<vmem>>, %arg19: memref<1x32xf32, #tpu.memory_space<vmem>>, %arg20: memref<32x128xbf16, #tpu.memory_space<vmem>>, %arg21: memref<1x128xf32, #tpu.memory_space<vmem>>, %arg22: memref<2x128xf32, #tpu.memory_space<vmem>>, %arg23: memref<2x8x32xf32, #tpu.memory_space<vmem>>) attributes {dimension_semantics = [#tpu.dimension_semantics<parallel>, #tpu.dimension_semantics<arbitrary>], iteration_bounds = array<i64: 1, 2>, scalar_prefetch = 0 : i64, scratch_operands = 1 : i64, tpu.core_type = #tpu.core_type<tc>, window_params = [{transform_indices = @transform_0, window_bounds = array<i64: 2, 8, 32>}, {transform_indices = @transform_1, window_bounds = array<i64: 2, 1, 8>}, {pipeline_mode = #tpu.pipeline_mode<synchronous>, transform_indices = @transform_2, window_bounds = array<i64: 1, 32>}, {pipeline_mode = #tpu.pipeline_mode<synchronous>, transform_indices = @transform_3, window_bounds = array<i64: 1, 32>}, {transform_indices = @transform_4, window_bounds = array<i64: 1, 32, 96>}, {transform_indices = @transform_5, window_bounds = array<i64: 1, 1, 96>}, {transform_indices = @transform_6, window_bounds = array<i64: 1, 32, 32>}, {transform_indices = @transform_7, window_bounds = array<i64: 1, 1, 32>}, {transform_indices = @transform_8, window_bounds = array<i64: 1, 1, 32>}, {transform_indices = @transform_9, window_bounds = array<i64: 1, 1, 32>}, {transform_indices = @transform_10, window_bounds = array<i64: 1, 32, 64>}, {transform_indices = @transform_11, window_bounds = array<i64: 1, 1, 64>}, {transform_indices = @transform_12, window_bounds = array<i64: 1, 64, 32>}, {transform_indices = @transform_13, window_bounds = array<i64: 1, 1, 32>}, {transform_indices = @transform_14, window_bounds = array<i64: 1, 1, 32>}, {transform_indices = @transform_15, window_bounds = array<i64: 1, 1, 32>}, {pipeline_mode = #tpu.pipeline_mode<synchronous>, transform_indices = @transform_16, window_bounds = array<i64: 32, 32>}, {pipeline_mode = #tpu.pipeline_mode<synchronous>, transform_indices = @transform_17, window_bounds = array<i64: 1, 32>}, {pipeline_mode = #tpu.pipeline_mode<synchronous>, transform_indices = @transform_18, window_bounds = array<i64: 32, 128>}, {pipeline_mode = #tpu.pipeline_mode<synchronous>, transform_indices = @transform_19, window_bounds = array<i64: 1, 128>}, {transform_indices = @transform_20, window_bounds = array<i64: 2, 128>}]} {
    %c0_i32 = arith.constant 0 : i32
    %0 = arith.cmpi eq, %arg1, %c0_i32 : i32
    %1 = arith.extui %0 : i1 to i32
    %c0_i32_0 = arith.constant 0 : i32
    %2 = arith.cmpi ne, %1, %c0_i32_0 : i32
    scf.if %2 {
      %c0_71 = arith.constant 0 : index
      %c0_72 = arith.constant 0 : index
      %c0_73 = arith.constant 0 : index
      %169 = vector.load %arg2[%c0_71, %c0_72, %c0_73] : memref<2x8x32xf32, #tpu.memory_space<vmem>>, vector<2x8x32xf32>
      %170 = vector.shape_cast %169 : vector<2x8x32xf32> to vector<16x32xf32>
      %c0_74 = arith.constant 0 : index
      %c0_75 = arith.constant 0 : index
      %171 = vector.load %arg4[%c0_74, %c0_75] : memref<1x32xf32, #tpu.memory_space<vmem>>, vector<1x32xf32>
      %c0_76 = arith.constant 0 : index
      %c0_77 = arith.constant 0 : index
      %172 = vector.load %arg5[%c0_76, %c0_77] : memref<1x32xf32, #tpu.memory_space<vmem>>, vector<1x32xf32>
      %cst_78 = arith.constant dense<0.000000e+00> : vector<16xf32>
      %173 = vector.multi_reduction <add>, %170, %cst_78 [1] : vector<16x32xf32> to vector<16xf32>
      %174 = vector.shape_cast %173 : vector<16xf32> to vector<16x1xf32>
      %cst_79 = arith.constant 3.200000e+01 : f32
      %175 = vector.broadcast %cst_79 : f32 to vector<16x1xf32>
      %176 = arith.divf %174, %175 : vector<16x1xf32>
      %177 = vector.broadcast %176 : vector<16x1xf32> to vector<16x32xf32>
      %178 = arith.subf %170, %177 : vector<16x32xf32>
      %179 = arith.mulf %178, %178 : vector<16x32xf32>
      %cst_80 = arith.constant dense<0.000000e+00> : vector<16xf32>
      %180 = vector.multi_reduction <add>, %179, %cst_80 [1] : vector<16x32xf32> to vector<16xf32>
      %181 = vector.shape_cast %180 : vector<16xf32> to vector<16x1xf32>
      %cst_81 = arith.constant 3.200000e+01 : f32
      %182 = vector.broadcast %cst_81 : f32 to vector<16x1xf32>
      %183 = arith.divf %181, %182 : vector<16x1xf32>
      %184 = vector.broadcast %176 : vector<16x1xf32> to vector<16x32xf32>
      %185 = arith.subf %170, %184 : vector<16x32xf32>
      %cst_82 = arith.constant 1.000000e-07 : f32
      %186 = vector.broadcast %cst_82 : f32 to vector<16x1xf32>
      %187 = arith.addf %183, %186 : vector<16x1xf32>
      %188 = math.rsqrt %187 : vector<16x1xf32>
      %189 = vector.broadcast %188 : vector<16x1xf32> to vector<16x32xf32>
      %190 = arith.mulf %185, %189 : vector<16x32xf32>
      %191 = vector.broadcast %171 : vector<1x32xf32> to vector<16x32xf32>
      %192 = arith.mulf %190, %191 : vector<16x32xf32>
      %193 = vector.broadcast %172 : vector<1x32xf32> to vector<16x32xf32>
      %194 = arith.addf %192, %193 : vector<16x32xf32>
      %195 = vector.shape_cast %194 : vector<16x32xf32> to vector<2x8x32xf32>
      %c0_83 = arith.constant 0 : index
      %c0_84 = arith.constant 0 : index
      %c0_85 = arith.constant 0 : index
      %196 = vector.load %arg23[%c0_83, %c0_84, %c0_85] : memref<2x8x32xf32, #tpu.memory_space<vmem>>, vector<2x8x32xf32>
      tpu.vector_store %arg23[%c0_83, %c0_84, %c0_85], %195 {strides = array<i32>} : memref<2x8x32xf32, #tpu.memory_space<vmem>>, vector<2x8x32xf32>,
      %cst_86 = arith.constant 0.000000e+00 : f32
      %197 = vector.broadcast %cst_86 : f32 to vector<2x128xf32>
      %c0_87 = arith.constant 0 : index
      %c0_88 = arith.constant 0 : index
      %198 = vector.load %arg22[%c0_87, %c0_88] : memref<2x128xf32, #tpu.memory_space<vmem>>, vector<2x128xf32>
      tpu.vector_store %arg22[%c0_87, %c0_88], %197 {strides = array<i32>} : memref<2x128xf32, #tpu.memory_space<vmem>>, vector<2x128xf32>,
    } else {
    }
    %c0 = arith.constant 0 : index
    %c0_1 = arith.constant 0 : index
    %c0_2 = arith.constant 0 : index
    %3 = vector.load %arg23[%c0, %c0_1, %c0_2] : memref<2x8x32xf32, #tpu.memory_space<vmem>>, vector<2x8x32xf32>
    %4 = vector.shape_cast %3 : vector<2x8x32xf32> to vector<16x32xf32>
    %5 = arith.truncf %4 : vector<16x32xf32> to vector<16x32xbf16>
    %c0_3 = arith.constant 0 : index
    %c0_4 = arith.constant 0 : index
    %c0_5 = arith.constant 0 : index
    %6 = vector.load %arg6[%c0_3, %c0_4, %c0_5] : memref<1x32x96xbf16, #tpu.memory_space<vmem>>, vector<1x32x96xbf16>
    %7 = vector.shape_cast %6 : vector<1x32x96xbf16> to vector<32x96xbf16>
    %cst = arith.constant dense<0.000000e+00> : vector<16x96xf32>
    %8 = tpu.matmul %5, %7, %cst {dimension_numbers = #tpu.dot_dimension_numbers<[1], [0], [0], [1], [0, 0, 1, 1], [], []>} : vector<16x32xbf16>, vector<32x96xbf16>, vector<16x96xf32> -> vector<16x96xf32>
    %c0_6 = arith.constant 0 : index
    %c0_7 = arith.constant 0 : index
    %c0_8 = arith.constant 0 : index
    %9 = vector.load %arg7[%c0_6, %c0_7, %c0_8] : memref<1x1x96xf32, #tpu.memory_space<vmem>>, vector<1x1x96xf32>
    %10 = vector.shape_cast %9 : vector<1x1x96xf32> to vector<1x96xf32>
    %11 = vector.broadcast %10 : vector<1x96xf32> to vector<16x96xf32>
    %12 = arith.addf %8, %11 : vector<16x96xf32>
    %13 = vector.extract_strided_slice %12 {offsets = [0, 0], sizes = [16, 32], strides = [1, 1]} : vector<16x96xf32> to vector<16x32xf32>
    %14 = arith.truncf %13 : vector<16x32xf32> to vector<16x32xbf16>
    %15 = vector.extract_strided_slice %12 {offsets = [0, 32], sizes = [16, 32], strides = [1, 1]} : vector<16x96xf32> to vector<16x32xf32>
    %16 = arith.truncf %15 : vector<16x32xf32> to vector<16x32xbf16>
    %17 = vector.extract_strided_slice %12 {offsets = [0, 64], sizes = [16, 32], strides = [1, 1]} : vector<16x96xf32> to vector<16x32xf32>
    %18 = arith.truncf %17 : vector<16x32xf32> to vector<16x32xbf16>
    %c0_9 = arith.constant 0 : index
    %c0_10 = arith.constant 0 : index
    %c0_11 = arith.constant 0 : index
    %19 = vector.load %arg3[%c0_9, %c0_10, %c0_11] : memref<2x1x8xf32, #tpu.memory_space<vmem>>, vector<2x1x8xf32>
    %20 = vector.extract_strided_slice %14 {offsets = [0, 0], sizes = [8, 32], strides = [1, 1]} : vector<16x32xbf16> to vector<8x32xbf16>
    %21 = vector.shape_cast %20 : vector<8x32xbf16> to vector<8x4x8xbf16>
    %22 = vector.extract_strided_slice %16 {offsets = [0, 0], sizes = [8, 32], strides = [1, 1]} : vector<16x32xbf16> to vector<8x32xbf16>
    %23 = vector.shape_cast %22 : vector<8x32xbf16> to vector<8x4x8xbf16>
    %24 = vector.extract_strided_slice %18 {offsets = [0, 0], sizes = [8, 32], strides = [1, 1]} : vector<16x32xbf16> to vector<8x32xbf16>
    %25 = vector.shape_cast %24 : vector<8x32xbf16> to vector<8x4x8xbf16>
    "tpu.trace_start"() <{level = 10 : i32, message = "qhd,khd->hqk"}> : () -> ()
    %cst_12 = arith.constant dense<0.000000e+00> : vector<4x8x8xf32>
    %26 = tpu.matmul %21, %23, %cst_12 {dimension_numbers = #tpu.dot_dimension_numbers<[2], [2], [0], [0], [0, 1, 0, 0, 1, 0], [1], [1]>} : vector<8x4x8xbf16>, vector<8x4x8xbf16>, vector<4x8x8xf32> -> vector<4x8x8xf32>
    "tpu.trace_stop"() : () -> ()
    %27 = vector.extract_strided_slice %19 {offsets = [0, 0, 0], sizes = [1, 1, 8], strides = [1, 1, 1]} : vector<2x1x8xf32> to vector<1x1x8xf32>
    %28 = vector.shape_cast %27 : vector<1x1x8xf32> to vector<1x8xf32>
    %29 = vector.shape_cast %28 : vector<1x8xf32> to vector<1x1x8xf32>
    %30 = vector.broadcast %29 : vector<1x1x8xf32> to vector<4x8x8xf32>
    %31 = arith.addf %26, %30 : vector<4x8x8xf32>
    %cst_13 = arith.constant dense<0xFF800000> : vector<4x8xf32>
    %32 = vector.multi_reduction <maximumf>, %31, %cst_13 [2] : vector<4x8x8xf32> to vector<4x8xf32>
    %33 = vector.shape_cast %32 : vector<4x8xf32> to vector<4x8x1xf32>
    %34 = vector.broadcast %33 : vector<4x8x1xf32> to vector<4x8x8xf32>
    %35 = arith.subf %31, %34 : vector<4x8x8xf32>
    %36 = math.exp %35 : vector<4x8x8xf32>
    %cst_14 = arith.constant dense<0.000000e+00> : vector<4x8xf32>
    %37 = vector.multi_reduction <add>, %36, %cst_14 [2] : vector<4x8x8xf32> to vector<4x8xf32>
    %38 = vector.shape_cast %37 : vector<4x8xf32> to vector<4x8x1xf32>
    %39 = tpu.reciprocal %38 {approx = true} : vector<4x8x1xf32> -> vector<4x8x1xf32>
    %40 = vector.broadcast %39 : vector<4x8x1xf32> to vector<4x8x8xf32>
    %41 = arith.mulf %36, %40 : vector<4x8x8xf32>
    %42 = arith.truncf %41 : vector<4x8x8xf32> to vector<4x8x8xbf16>
    "tpu.trace_start"() <{level = 10 : i32, message = "hqk,khd->qhd"}> : () -> ()
    %cst_15 = arith.constant dense<0.000000e+00> : vector<4x8x8xf32>
    %43 = tpu.matmul %25, %42, %cst_15 {dimension_numbers = #tpu.dot_dimension_numbers<[0], [2], [2], [1], [0, 1, 0, 2, 1, 1], [1], [0]>} : vector<8x4x8xbf16>, vector<4x8x8xbf16>, vector<4x8x8xf32> -> vector<4x8x8xf32>
    %44 = tpu.transpose %43, [2, 0, 1] : vector<4x8x8xf32> -> vector<8x4x8xf32>
    "tpu.trace_stop"() : () -> ()
    %45 = vector.shape_cast %44 : vector<8x4x8xf32> to vector<8x32xf32>
    %46 = vector.extract_strided_slice %14 {offsets = [8, 0], sizes = [8, 32], strides = [1, 1]} : vector<16x32xbf16> to vector<8x32xbf16>
    %47 = vector.shape_cast %46 : vector<8x32xbf16> to vector<8x4x8xbf16>
    %48 = vector.extract_strided_slice %16 {offsets = [8, 0], sizes = [8, 32], strides = [1, 1]} : vector<16x32xbf16> to vector<8x32xbf16>
    %49 = vector.shape_cast %48 : vector<8x32xbf16> to vector<8x4x8xbf16>
    %50 = vector.extract_strided_slice %18 {offsets = [8, 0], sizes = [8, 32], strides = [1, 1]} : vector<16x32xbf16> to vector<8x32xbf16>
    %51 = vector.shape_cast %50 : vector<8x32xbf16> to vector<8x4x8xbf16>
    "tpu.trace_start"() <{level = 10 : i32, message = "qhd,khd->hqk"}> : () -> ()
    %cst_16 = arith.constant dense<0.000000e+00> : vector<4x8x8xf32>
    %52 = tpu.matmul %47, %49, %cst_16 {dimension_numbers = #tpu.dot_dimension_numbers<[2], [2], [0], [0], [0, 1, 0, 0, 1, 0], [1], [1]>} : vector<8x4x8xbf16>, vector<8x4x8xbf16>, vector<4x8x8xf32> -> vector<4x8x8xf32>
    "tpu.trace_stop"() : () -> ()
    %53 = vector.extract_strided_slice %19 {offsets = [1, 0, 0], sizes = [1, 1, 8], strides = [1, 1, 1]} : vector<2x1x8xf32> to vector<1x1x8xf32>
    %54 = vector.shape_cast %53 : vector<1x1x8xf32> to vector<1x8xf32>
    %55 = vector.shape_cast %54 : vector<1x8xf32> to vector<1x1x8xf32>
    %56 = vector.broadcast %55 : vector<1x1x8xf32> to vector<4x8x8xf32>
    %57 = arith.addf %52, %56 : vector<4x8x8xf32>
    %cst_17 = arith.constant dense<0xFF800000> : vector<4x8xf32>
    %58 = vector.multi_reduction <maximumf>, %57, %cst_17 [2] : vector<4x8x8xf32> to vector<4x8xf32>
    %59 = vector.shape_cast %58 : vector<4x8xf32> to vector<4x8x1xf32>
    %60 = vector.broadcast %59 : vector<4x8x1xf32> to vector<4x8x8xf32>
    %61 = arith.subf %57, %60 : vector<4x8x8xf32>
    %62 = math.exp %61 : vector<4x8x8xf32>
    %cst_18 = arith.constant dense<0.000000e+00> : vector<4x8xf32>
    %63 = vector.multi_reduction <add>, %62, %cst_18 [2] : vector<4x8x8xf32> to vector<4x8xf32>
    %64 = vector.shape_cast %63 : vector<4x8xf32> to vector<4x8x1xf32>
    %65 = tpu.reciprocal %64 {approx = true} : vector<4x8x1xf32> -> vector<4x8x1xf32>
    %66 = vector.broadcast %65 : vector<4x8x1xf32> to vector<4x8x8xf32>
    %67 = arith.mulf %62, %66 : vector<4x8x8xf32>
    %68 = arith.truncf %67 : vector<4x8x8xf32> to vector<4x8x8xbf16>
    "tpu.trace_start"() <{level = 10 : i32, message = "hqk,khd->qhd"}> : () -> ()
    %cst_19 = arith.constant dense<0.000000e+00> : vector<4x8x8xf32>
    %69 = tpu.matmul %51, %68, %cst_19 {dimension_numbers = #tpu.dot_dimension_numbers<[0], [2], [2], [1], [0, 1, 0, 2, 1, 1], [1], [0]>} : vector<8x4x8xbf16>, vector<4x8x8xbf16>, vector<4x8x8xf32> -> vector<4x8x8xf32>
    %70 = tpu.transpose %69, [2, 0, 1] : vector<4x8x8xf32> -> vector<8x4x8xf32>
    "tpu.trace_stop"() : () -> ()
    %71 = vector.shape_cast %70 : vector<8x4x8xf32> to vector<8x32xf32>
    %72 = tpu.concatenate %45, %71 in 0 : vector<8x32xf32>, vector<8x32xf32> -> vector<16x32xf32>
    %73 = arith.truncf %72 : vector<16x32xf32> to vector<16x32xbf16>
    %c0_20 = arith.constant 0 : index
    %c0_21 = arith.constant 0 : index
    %c0_22 = arith.constant 0 : index
    %74 = vector.load %arg8[%c0_20, %c0_21, %c0_22] : memref<1x32x32xbf16, #tpu.memory_space<vmem>>, vector<1x32x32xbf16>
    %75 = vector.shape_cast %74 : vector<1x32x32xbf16> to vector<32x32xbf16>
    %cst_23 = arith.constant dense<0.000000e+00> : vector<16x32xf32>
    %76 = tpu.matmul %73, %75, %cst_23 {dimension_numbers = #tpu.dot_dimension_numbers<[1], [0], [0], [1], [0, 0, 1, 1], [], []>} : vector<16x32xbf16>, vector<32x32xbf16>, vector<16x32xf32> -> vector<16x32xf32>
    %c0_24 = arith.constant 0 : index
    %c0_25 = arith.constant 0 : index
    %c0_26 = arith.constant 0 : index
    %77 = vector.load %arg9[%c0_24, %c0_25, %c0_26] : memref<1x1x32xf32, #tpu.memory_space<vmem>>, vector<1x1x32xf32>
    %78 = vector.shape_cast %77 : vector<1x1x32xf32> to vector<1x32xf32>
    %79 = vector.broadcast %78 : vector<1x32xf32> to vector<16x32xf32>
    %80 = arith.addf %76, %79 : vector<16x32xf32>
    %81 = arith.addf %4, %80 : vector<16x32xf32>
    %c0_27 = arith.constant 0 : index
    %c0_28 = arith.constant 0 : index
    %c0_29 = arith.constant 0 : index
    %82 = vector.load %arg10[%c0_27, %c0_28, %c0_29] : memref<1x1x32xf32, #tpu.memory_space<vmem>>, vector<1x1x32xf32>
    %83 = vector.shape_cast %82 : vector<1x1x32xf32> to vector<1x32xf32>
    %c0_30 = arith.constant 0 : index
    %c0_31 = arith.constant 0 : index
    %c0_32 = arith.constant 0 : index
    %84 = vector.load %arg11[%c0_30, %c0_31, %c0_32] : memref<1x1x32xf32, #tpu.memory_space<vmem>>, vector<1x1x32xf32>
    %85 = vector.shape_cast %84 : vector<1x1x32xf32> to vector<1x32xf32>
    %cst_33 = arith.constant dense<0.000000e+00> : vector<16xf32>
    %86 = vector.multi_reduction <add>, %81, %cst_33 [1] : vector<16x32xf32> to vector<16xf32>
    %87 = vector.shape_cast %86 : vector<16xf32> to vector<16x1xf32>
    %cst_34 = arith.constant 3.200000e+01 : f32
    %88 = vector.broadcast %cst_34 : f32 to vector<16x1xf32>
    %89 = arith.divf %87, %88 : vector<16x1xf32>
    %90 = vector.broadcast %89 : vector<16x1xf32> to vector<16x32xf32>
    %91 = arith.subf %81, %90 : vector<16x32xf32>
    %92 = arith.mulf %91, %91 : vector<16x32xf32>
    %cst_35 = arith.constant dense<0.000000e+00> : vector<16xf32>
    %93 = vector.multi_reduction <add>, %92, %cst_35 [1] : vector<16x32xf32> to vector<16xf32>
    %94 = vector.shape_cast %93 : vector<16xf32> to vector<16x1xf32>
    %cst_36 = arith.constant 3.200000e+01 : f32
    %95 = vector.broadcast %cst_36 : f32 to vector<16x1xf32>
    %96 = arith.divf %94, %95 : vector<16x1xf32>
    %97 = vector.broadcast %89 : vector<16x1xf32> to vector<16x32xf32>
    %98 = arith.subf %81, %97 : vector<16x32xf32>
    %cst_37 = arith.constant 1.000000e-07 : f32
    %99 = vector.broadcast %cst_37 : f32 to vector<16x1xf32>
    %100 = arith.addf %96, %99 : vector<16x1xf32>
    %101 = math.rsqrt %100 : vector<16x1xf32>
    %102 = vector.broadcast %101 : vector<16x1xf32> to vector<16x32xf32>
    %103 = arith.mulf %98, %102 : vector<16x32xf32>
    %104 = vector.broadcast %83 : vector<1x32xf32> to vector<16x32xf32>
    %105 = arith.mulf %103, %104 : vector<16x32xf32>
    %106 = vector.broadcast %85 : vector<1x32xf32> to vector<16x32xf32>
    %107 = arith.addf %105, %106 : vector<16x32xf32>
    %108 = arith.truncf %107 : vector<16x32xf32> to vector<16x32xbf16>
    %c0_38 = arith.constant 0 : index
    %c0_39 = arith.constant 0 : index
    %c0_40 = arith.constant 0 : index
    %109 = vector.load %arg12[%c0_38, %c0_39, %c0_40] : memref<1x32x64xbf16, #tpu.memory_space<vmem>>, vector<1x32x64xbf16>
    %110 = vector.shape_cast %109 : vector<1x32x64xbf16> to vector<32x64xbf16>
    %cst_41 = arith.constant dense<0.000000e+00> : vector<16x64xf32>
    %111 = tpu.matmul %108, %110, %cst_41 {dimension_numbers = #tpu.dot_dimension_numbers<[1], [0], [0], [1], [0, 0, 1, 1], [], []>} : vector<16x32xbf16>, vector<32x64xbf16>, vector<16x64xf32> -> vector<16x64xf32>
    %c0_42 = arith.constant 0 : index
    %c0_43 = arith.constant 0 : index
    %c0_44 = arith.constant 0 : index
    %112 = vector.load %arg13[%c0_42, %c0_43, %c0_44] : memref<1x1x64xf32, #tpu.memory_space<vmem>>, vector<1x1x64xf32>
    %113 = vector.shape_cast %112 : vector<1x1x64xf32> to vector<1x64xf32>
    %114 = vector.broadcast %113 : vector<1x64xf32> to vector<16x64xf32>
    %115 = arith.addf %111, %114 : vector<16x64xf32>
    %116 = arith.mulf %115, %115 : vector<16x64xf32>
    %117 = arith.mulf %115, %116 : vector<16x64xf32>
    %cst_45 = arith.constant 4.471500e-02 : f32
    %118 = vector.broadcast %cst_45 : f32 to vector<16x64xf32>
    %119 = arith.mulf %118, %117 : vector<16x64xf32>
    %120 = arith.addf %115, %119 : vector<16x64xf32>
    %cst_46 = arith.constant 0.797884583 : f32
    %121 = vector.broadcast %cst_46 : f32 to vector<16x64xf32>
    %122 = arith.mulf %121, %120 : vector<16x64xf32>
    %123 = math.tanh %122 : vector<16x64xf32>
    %cst_47 = arith.constant 1.000000e+00 : f32
    %124 = vector.broadcast %cst_47 : f32 to vector<16x64xf32>
    %125 = arith.addf %124, %123 : vector<16x64xf32>
    %cst_48 = arith.constant 5.000000e-01 : f32
    %126 = vector.broadcast %cst_48 : f32 to vector<16x64xf32>
    %127 = arith.mulf %126, %125 : vector<16x64xf32>
    %128 = arith.mulf %115, %127 : vector<16x64xf32>
    %129 = arith.truncf %128 : vector<16x64xf32> to vector<16x64xbf16>
    %c0_49 = arith.constant 0 : index
    %c0_50 = arith.constant 0 : index
    %c0_51 = arith.constant 0 : index
    %130 = vector.load %arg14[%c0_49, %c0_50, %c0_51] : memref<1x64x32xbf16, #tpu.memory_space<vmem>>, vector<1x64x32xbf16>
    %131 = vector.shape_cast %130 : vector<1x64x32xbf16> to vector<64x32xbf16>
    %cst_52 = arith.constant dense<0.000000e+00> : vector<16x32xf32>
    %132 = tpu.matmul %129, %131, %cst_52 {dimension_numbers = #tpu.dot_dimension_numbers<[1], [0], [0], [1], [0, 0, 1, 1], [], []>} : vector<16x64xbf16>, vector<64x32xbf16>, vector<16x32xf32> -> vector<16x32xf32>
    %c0_53 = arith.constant 0 : index
    %c0_54 = arith.constant 0 : index
    %c0_55 = arith.constant 0 : index
    %133 = vector.load %arg15[%c0_53, %c0_54, %c0_55] : memref<1x1x32xf32, #tpu.memory_space<vmem>>, vector<1x1x32xf32>
    %134 = vector.shape_cast %133 : vector<1x1x32xf32> to vector<1x32xf32>
    %135 = vector.broadcast %134 : vector<1x32xf32> to vector<16x32xf32>
    %136 = arith.addf %132, %135 : vector<16x32xf32>
    %137 = arith.addf %107, %136 : vector<16x32xf32>
    %c0_56 = arith.constant 0 : index
    %c0_57 = arith.constant 0 : index
    %c0_58 = arith.constant 0 : index
    %138 = vector.load %arg16[%c0_56, %c0_57, %c0_58] : memref<1x1x32xf32, #tpu.memory_space<vmem>>, vector<1x1x32xf32>
    %139 = vector.shape_cast %138 : vector<1x1x32xf32> to vector<1x32xf32>
    %c0_59 = arith.constant 0 : index
    %c0_60 = arith.constant 0 : index
    %c0_61 = arith.constant 0 : index
    %140 = vector.load %arg17[%c0_59, %c0_60, %c0_61] : memref<1x1x32xf32, #tpu.memory_space<vmem>>, vector<1x1x32xf32>
    %141 = vector.shape_cast %140 : vector<1x1x32xf32> to vector<1x32xf32>
    %cst_62 = arith.constant dense<0.000000e+00> : vector<16xf32>
    %142 = vector.multi_reduction <add>, %137, %cst_62 [1] : vector<16x32xf32> to vector<16xf32>
    %143 = vector.shape_cast %142 : vector<16xf32> to vector<16x1xf32>
    %cst_63 = arith.constant 3.200000e+01 : f32
    %144 = vector.broadcast %cst_63 : f32 to vector<16x1xf32>
    %145 = arith.divf %143, %144 : vector<16x1xf32>
    %146 = vector.broadcast %145 : vector<16x1xf32> to vector<16x32xf32>
    %147 = arith.subf %137, %146 : vector<16x32xf32>
    %148 = arith.mulf %147, %147 : vector<16x32xf32>
    %cst_64 = arith.constant dense<0.000000e+00> : vector<16xf32>
    %149 = vector.multi_reduction <add>, %148, %cst_64 [1] : vector<16x32xf32> to vector<16xf32>
    %150 = vector.shape_cast %149 : vector<16xf32> to vector<16x1xf32>
    %cst_65 = arith.constant 3.200000e+01 : f32
    %151 = vector.broadcast %cst_65 : f32 to vector<16x1xf32>
    %152 = arith.divf %150, %151 : vector<16x1xf32>
    %153 = vector.broadcast %145 : vector<16x1xf32> to vector<16x32xf32>
    %154 = arith.subf %137, %153 : vector<16x32xf32>
    %cst_66 = arith.constant 1.000000e-07 : f32
    %155 = vector.broadcast %cst_66 : f32 to vector<16x1xf32>
    %156 = arith.addf %152, %155 : vector<16x1xf32>
    %157 = math.rsqrt %156 : vector<16x1xf32>
    %158 = vector.broadcast %157 : vector<16x1xf32> to vector<16x32xf32>
    %159 = arith.mulf %154, %158 : vector<16x32xf32>
    %160 = vector.broadcast %139 : vector<1x32xf32> to vector<16x32xf32>
    %161 = arith.mulf %159, %160 : vector<16x32xf32>
    %162 = vector.broadcast %141 : vector<1x32xf32> to vector<16x32xf32>
    %163 = arith.addf %161, %162 : vector<16x32xf32>
    %164 = vector.shape_cast %163 : vector<16x32xf32> to vector<2x8x32xf32>
    %c0_67 = arith.constant 0 : index
    %c0_68 = arith.constant 0 : index
    %c0_69 = arith.constant 0 : index
    %165 = vector.load %arg23[%c0_67, %c0_68, %c0_69] : memref<2x8x32xf32, #tpu.memory_space<vmem>>, vector<2x8x32xf32>
    tpu.vector_store %arg23[%c0_67, %c0_68, %c0_69], %164 {strides = array<i32>} : memref<2x8x32xf32, #tpu.memory_space<vmem>>, vector<2x8x32xf32>,
    %c1_i32 = arith.constant 1 : i32
    %166 = arith.cmpi eq, %arg1, %c1_i32 : i32
    %167 = arith.extui %166 : i1 to i32
    %c0_i32_70 = arith.constant 0 : i32
    %168 = arith.cmpi ne, %167, %c0_i32_70 : i32
    scf.if %168 {
      %c0_71 = arith.constant 0 : index
      %c0_72 = arith.constant 0 : index
      %c0_73 = arith.constant 0 : index
      %169 = vector.load %arg23[%c0_71, %c0_72, %c0_73] : memref<2x8x32xf32, #tpu.memory_space<vmem>>, vector<2x1x32xf32>
      %170 = vector.shape_cast %169 : vector<2x1x32xf32> to vector<2x32xf32>
      %171 = arith.truncf %170 : vector<2x32xf32> to vector<2x32xbf16>
      %c0_74 = arith.constant 0 : index
      %c0_75 = arith.constant 0 : index
      %172 = vector.load %arg18[%c0_74, %c0_75] : memref<32x32xbf16, #tpu.memory_space<vmem>>, vector<32x32xbf16>
      %cst_76 = arith.constant dense<0.000000e+00> : vector<2x32xf32>
      %173 = tpu.matmul %171, %172, %cst_76 {dimension_numbers = #tpu.dot_dimension_numbers<[1], [0], [0], [1], [0, 0, 1, 1], [], []>} : vector<2x32xbf16>, vector<32x32xbf16>, vector<2x32xf32> -> vector<2x32xf32>
      %c0_77 = arith.constant 0 : index
      %c0_78 = arith.constant 0 : index
      %174 = vector.load %arg19[%c0_77, %c0_78] : memref<1x32xf32, #tpu.memory_space<vmem>>, vector<1x32xf32>
      %175 = vector.broadcast %174 : vector<1x32xf32> to vector<2x32xf32>
      %176 = arith.addf %173, %175 : vector<2x32xf32>
      %177 = math.tanh %176 : vector<2x32xf32>
      %178 = arith.truncf %177 : vector<2x32xf32> to vector<2x32xbf16>
      %c0_79 = arith.constant 0 : index
      %c0_80 = arith.constant 0 : index
      %179 = vector.load %arg20[%c0_79, %c0_80] : memref<32x128xbf16, #tpu.memory_space<vmem>>, vector<32x128xbf16>
      %cst_81 = arith.constant dense<0.000000e+00> : vector<2x128xf32>
      %180 = tpu.matmul %178, %179, %cst_81 {dimension_numbers = #tpu.dot_dimension_numbers<[1], [0], [0], [1], [0, 0, 1, 1], [], []>} : vector<2x32xbf16>, vector<32x128xbf16>, vector<2x128xf32> -> vector<2x128xf32>
      %c0_82 = arith.constant 0 : index
      %c0_83 = arith.constant 0 : index
      %181 = vector.load %arg21[%c0_82, %c0_83] : memref<1x128xf32, #tpu.memory_space<vmem>>, vector<1x128xf32>
      %182 = vector.broadcast %181 : vector<1x128xf32> to vector<2x128xf32>
      %183 = arith.addf %180, %182 : vector<2x128xf32>
      %c0_84 = arith.constant 0 : index
      %c0_85 = arith.constant 0 : index
      %184 = vector.load %arg22[%c0_84, %c0_85] : memref<2x128xf32, #tpu.memory_space<vmem>>, vector<2x128xf32>
      tpu.vector_store %arg22[%c0_84, %c0_85], %183 {strides = array<i32>} : memref<2x128xf32, #tpu.memory_space<vmem>>, vector<2x128xf32>,
    } else {
    }
    return
  }
  func.func @transform_0(%arg0: i32, %arg1: i32) -> (i32, i32, i32) {
    %c0_i32 = arith.constant 0 : i32
    %c0_i32_0 = arith.constant 0 : i32
    %c0_i32_1 = arith.constant 0 : i32
    return %arg0, %c0_i32, %c0_i32_0 : i32, i32, i32
  }
  func.func @transform_1(%arg0: i32, %arg1: i32) -> (i32, i32, i32) {
    %c0_i32 = arith.constant 0 : i32
    %c0_i32_0 = arith.constant 0 : i32
    %c0_i32_1 = arith.constant 0 : i32
    return %arg0, %c0_i32, %c0_i32_0 : i32, i32, i32
  }
  func.func @transform_2(%arg0: i32, %arg1: i32) -> (i32, i32) {
    %c0_i32 = arith.constant 0 : i32
    %c0_i32_0 = arith.constant 0 : i32
    %c0_i32_1 = arith.constant 0 : i32
    return %c0_i32, %c0_i32_0 : i32, i32
  }
  func.func @transform_3(%arg0: i32, %arg1: i32) -> (i32, i32) {
    %c0_i32 = arith.constant 0 : i32
    %c0_i32_0 = arith.constant 0 : i32
    %c0_i32_1 = arith.constant 0 : i32
    return %c0_i32, %c0_i32_0 : i32, i32
  }
  func.func @transform_4(%arg0: i32, %arg1: i32) -> (i32, i32, i32) {
    %c0_i32 = arith.constant 0 : i32
    %c0_i32_0 = arith.constant 0 : i32
    %c0_i32_1 = arith.constant 0 : i32
    return %arg1, %c0_i32, %c0_i32_0 : i32, i32, i32
  }
  func.func @transform_5(%arg0: i32, %arg1: i32) -> (i32, i32, i32) {
    %c0_i32 = arith.constant 0 : i32
    %c0_i32_0 = arith.constant 0 : i32
    %c0_i32_1 = arith.constant 0 : i32
    return %arg1, %c0_i32, %c0_i32_0 : i32, i32, i32
  }
  func.func @transform_6(%arg0: i32, %arg1: i32) -> (i32, i32, i32) {
    %c0_i32 = arith.constant 0 : i32
    %c0_i32_0 = arith.constant 0 : i32
    %c0_i32_1 = arith.constant 0 : i32
    return %arg1, %c0_i32, %c0_i32_0 : i32, i32, i32
  }
  func.func @transform_7(%arg0: i32, %arg1: i32) -> (i32, i32, i32) {
    %c0_i32 = arith.constant 0 : i32
    %c0_i32_0 = arith.constant 0 : i32
    %c0_i32_1 = arith.constant 0 : i32
    return %arg1, %c0_i32, %c0_i32_0 : i32, i32, i32
  }
  func.func @transform_8(%arg0: i32, %arg1: i32) -> (i32, i32, i32) {
    %c0_i32 = arith.constant 0 : i32
    %c0_i32_0 = arith.constant 0 : i32
    %c0_i32_1 = arith.constant 0 : i32
    return %arg1, %c0_i32, %c0_i32_0 : i32, i32, i32
  }
  func.func @transform_9(%arg0: i32, %arg1: i32) -> (i32, i32, i32) {
    %c0_i32 = arith.constant 0 : i32
    %c0_i32_0 = arith.constant 0 : i32
    %c0_i32_1 = arith.constant 0 : i32
    return %arg1, %c0_i32, %c0_i32_0 : i32, i32, i32
  }
  func.func @transform_10(%arg0: i32, %arg1: i32) -> (i32, i32, i32) {
    %c0_i32 = arith.constant 0 : i32
    %c0_i32_0 = arith.constant 0 : i32
    %c0_i32_1 = arith.constant 0 : i32
    return %arg1, %c0_i32, %c0_i32_0 : i32, i32, i32
  }
  func.func @transform_11(%arg0: i32, %arg1: i32) -> (i32, i32, i32) {
    %c0_i32 = arith.constant 0 : i32
    %c0_i32_0 = arith.constant 0 : i32
    %c0_i32_1 = arith.constant 0 : i32
    return %arg1, %c0_i32, %c0_i32_0 : i32, i32, i32
  }
  func.func @transform_12(%arg0: i32, %arg1: i32) -> (i32, i32, i32) {
    %c0_i32 = arith.constant 0 : i32
    %c0_i32_0 = arith.constant 0 : i32
    %c0_i32_1 = arith.constant 0 : i32
    return %arg1, %c0_i32, %c0_i32_0 : i32, i32, i32
  }
  func.func @transform_13(%arg0: i32, %arg1: i32) -> (i32, i32, i32) {
    %c0_i32 = arith.constant 0 : i32
    %c0_i32_0 = arith.constant 0 : i32
    %c0_i32_1 = arith.constant 0 : i32
    return %arg1, %c0_i32, %c0_i32_0 : i32, i32, i32
  }
  func.func @transform_14(%arg0: i32, %arg1: i32) -> (i32, i32, i32) {
    %c0_i32 = arith.constant 0 : i32
    %c0_i32_0 = arith.constant 0 : i32
    %c0_i32_1 = arith.constant 0 : i32
    return %arg1, %c0_i32, %c0_i32_0 : i32, i32, i32
  }
  func.func @transform_15(%arg0: i32, %arg1: i32) -> (i32, i32, i32) {
    %c0_i32 = arith.constant 0 : i32
    %c0_i32_0 = arith.constant 0 : i32
    %c0_i32_1 = arith.constant 0 : i32
    return %arg1, %c0_i32, %c0_i32_0 : i32, i32, i32
  }
  func.func @transform_16(%arg0: i32, %arg1: i32) -> (i32, i32) {
    %c0_i32 = arith.constant 0 : i32
    %c0_i32_0 = arith.constant 0 : i32
    %c0_i32_1 = arith.constant 0 : i32
    return %c0_i32, %c0_i32_0 : i32, i32
  }
  func.func @transform_17(%arg0: i32, %arg1: i32) -> (i32, i32) {
    %c0_i32 = arith.constant 0 : i32
    %c0_i32_0 = arith.constant 0 : i32
    %c0_i32_1 = arith.constant 0 : i32
    return %c0_i32, %c0_i32_0 : i32, i32
  }
  func.func @transform_18(%arg0: i32, %arg1: i32) -> (i32, i32) {
    %c0_i32 = arith.constant 0 : i32
    %c0_i32_0 = arith.constant 0 : i32
    %c0_i32_1 = arith.constant 0 : i32
    return %c0_i32, %c0_i32_0 : i32, i32
  }
  func.func @transform_19(%arg0: i32, %arg1: i32) -> (i32, i32) {
    %c0_i32 = arith.constant 0 : i32
    %c0_i32_0 = arith.constant 0 : i32
    %c0_i32_1 = arith.constant 0 : i32
    return %c0_i32, %c0_i32_0 : i32, i32
  }
  func.func @transform_20(%arg0: i32, %arg1: i32) -> (i32, i32) {
    %c0_i32 = arith.constant 0 : i32
    %c0_i32_0 = arith.constant 0 : i32
    return %arg0, %c0_i32 : i32, i32
  }
}

</mosaic_0001>

<bundles_post_ra>
// kernel: tpu_custom_call.1
= control target key start
LH: loop header
LB: loop body
LE: loop exit
PB: predicated region body
PF: predicated region fallthrough
CT: control target
= control target key end

     0   :  { %s5612_s0 = inlined_call_operand.hbm [shape: f32[2,8,32], index: 0, kind: input, shape index: {}]   ;;  %s5613_s1 = inlined_call_operand.hbm [shape: f32[2,1,8], index: 1, kind: input, shape index: {}]   ;;  %s5614_s2 = inlined_call_operand.hbm [shape: f32[1,32], index: 2, kind: input, shape index: {}]   ;;  %s5615_s3 = inlined_call_operand.hbm [shape: f32[1,32], index: 3, kind: input, shape index: {}]   ;;  %s5616_s4 = inlined_call_operand.vmem [shape: bf16[2,32,96], index: 4, kind: input, shape index: {}]   ;;  %s5617_s5 = inlined_call_operand.hbm [shape: f32[2,1,96], index: 5, kind: input, shape index: {}]   ;;  %s5618_s6 = inlined_call_operand.vmem [shape: bf16[2,32,32], index: 6, kind: input, shape index: {}]   ;;  %s5619_s7 = inlined_call_operand.hbm [shape: f32[2,1,32], index: 7, kind: input, shape index: {}]   ;;  %s5620_s8 = inlined_call_operand.hbm [shape: f32[2,1,32], index: 8, kind: input, shape index: {}]   ;;  %s5621_s9 = inlined_call_operand.hbm [shape: f32[2,1,32], index: 9, kind: input, shape index: {}]   ;;  %s5622_s10 = inlined_call_operand.vmem [shape: bf16[2,32,64], index: 10, kind: input, shape index: {}]   ;;  %s5623_s11 = inlined_call_operand.hbm [shape: f32[2,1,64], index: 11, kind: input, shape index: {}]   ;;  %s5624_s12 = inlined_call_operand.vmem [shape: bf16[2,64,32], index: 12, kind: input, shape index: {}]   ;;  %s5625_s13 = inlined_call_operand.hbm [shape: f32[2,1,32], index: 13, kind: input, shape index: {}]   ;;  %s5626_s14 = inlined_call_operand.hbm [shape: f32[2,1,32], index: 14, kind: input, shape index: {}]   ;;  %s5627_s15 = inlined_call_operand.hbm [shape: f32[2,1,32], index: 15, kind: input, shape index: {}]   ;;  %s5628_s16 = inlined_call_operand.vmem [shape: bf16[32,32], index: 16, kind: input, shape index: {}]   ;;  %s5629_s17 = inlined_call_operand.hbm [shape: f32[1,32], index: 17, kind: input, shape index: {}]   ;;  %s5630_s18 = inlined_call_operand.vmem [shape: bf16[32,128], index: 18, kind: input, shape index: {}]   ;;  %s5631_s19 = inlined_call_operand.vmem [shape: f32[1,128], index: 19, kind: input, shape index: {}]   ;;  %s5632_s20 = inlined_call_operand.hbm [shape: f32[2,128], index: 20, kind: output, shape index: {}]  }
   0x1   :  { %5662 = sst [smem:[#allocation34_spill]] %s5612_s0 }
   0x2   :  { %5663 = sst [smem:[#allocation35_spill]] %s5613_s1 }
   0x3   :  { %5664 = sst [smem:[#allocation36_spill]] %s5614_s2 }
   0x4   :  { %5665 = sst [smem:[#allocation37_spill]] %s5615_s3 }
   0x5   :  { %5666 = sst [smem:[#allocation38_spill]] %s5616_s4 }
   0x6   :  { %5667 = sst [smem:[#allocation39_spill]] %s5617_s5 }
   0x7   :  { %5668 = sst [smem:[#allocation40_spill]] %s5618_s6 }
   0x8   :  { %5669 = sst [smem:[#allocation41_spill]] %s5619_s7 }
   0x9   :  { %5670 = sst [smem:[#allocation42_spill]] %s5620_s8 }
   0xa   :  { %5671 = sst [smem:[#allocation43_spill]] %s5622_s10 }
   0xb   :  { %5672 = sst [smem:[#allocation44_spill]] %s5624_s12 }
   0xc   :  { %5673 = sst [smem:[#allocation45_spill]] %s5628_s16 }
   0xd   :  { %5674 = sst [smem:[#allocation46_spill]] %s5630_s18 }
   0xe   :  { %5675 = sst [smem:[#allocation47_spill]] %s5631_s19 }
   0xf   :  { %5676 = sst [smem:[#allocation48_spill]] %s5632_s20 }
  0x10   :  { %25 = vsyncpa [#allocation4], 0 }
  0x11   :  { %26 = vsyncpa [#allocation7], 0 }
  0x12   :  { %27 = vsyncpa [#allocation10], 0 }
  0x13   :  { %28 = vsyncpa [#allocation5], 0  ;;  %s4806_s1 = smov 0   ;;  %s4808_s22 = smov 0  }
  0x14   :  { %s4810_s23 = smov 0   ;;  %s4812_s24 = smov 0  }
  0x15   :  { %s4814_s2 = smov 0   ;;  %s4816_s25 = smov 0  }
  0x16 LB: > { %5677 = sst [smem:[#allocation27_spill]] %s4654_s23  ;;  %s4835_s3 = sadd.s32 4294967295, %s4666_s25   ;;  %s4666_s25 = sphi %s4816_s25, %s34_s25   ;;  %s4662_s2 = sphi %s4814_s2, %s5748_s2   ;;  %s4658_s24 = sphi %s4812_s24, %s5747_s24   ;;  %s4654_s23 = sphi %s4810_s23, %s5751_s23   ;;  %s4650_s22 = sphi %s4808_s22, %s5750_s22   ;;  %s4646_s1 = sphi %s4806_s1, %s5749_s1  }
  0x17   : > { %5678 = sst [smem:[#allocation28_spill]] %s4658_s24  ;;  %p180_p0 = scmp.ne.s32.totalorder %s4654_s23, %s4650_s22 }
  0x18   : > { %5679 = sst [smem:[#allocation29_spill]] %s4662_s2  ;;  %p181_p1 = scmp.eq.s32.totalorder %s4666_s25, 0 }
  0x19   : > { %5680 = sst [smem:[#allocation30_spill]] %s4666_s25  ;;  %p186_p2 = scmp.ne.s32.totalorder %s4650_s22, %s4646_s1 }
  0x1a   : > { %p5640_p3 = scmp.eq.s32.totalorder %s4835_s3, 0  ;;  %p3648_p4 = scmp.ge.s32.totalorder %s4666_s25, 1 }
  0x1b   : > { %p182_p5 = por %p181_p1, %p180_p0  ;;  %p567_p6 = scmp.lt.s32.totalorder %s4666_s25, 3 }
  0x1c   : > { %p4846_p7 = por %p5640_p3, %p186_p2  ;;  %s4668_s28 = smov [#allocation3]  }
  0x1d   : > { %p4850_p8 = pnand %p3648_p4, %p567_p6  ;;  %s582_s4 = sshll.u32 %s4668_s28, 4  ;;  %s583_s4 = int_to_ptr.vmem [resolvable:$true] %s582_s4 }
  0x1e   : > { %s5681_s26 = scalar_select %p4846_p7, 1, 0 }
  0x1f   : > { %s5683_s27 = scalar_select %p4850_p8, 1, 0 }
  0x20   : > { %5682 = sst [smem:[#allocation31_spill]] %s5681_s26  ;;  %p3981_p9 = pneg %p4850_p8 }
  0x21   : > { %p4027_p11 = scmp.lt.s32.totalorder %s4666_s25, 2  ;;  %s5686_s20 = sld [smem:[#allocation34_spill]] }
  0x22   : > { %p4858_p10 = pnand %p3981_p9, %p5640_p3 }
  0x23   : > { %p4864_p12 = pnand %p4027_p11, %p182_p5 }
  0x24   : > { %s5684_s29 = scalar_select %p4858_p10, 1, 0 }
  0x25   : > { %s5685_s0 = scalar_select %p4864_p12, 1, 0 }
  0x26   : > { %p4876_p0 = pneg %p4858_p10 }
  0x27   : > { %s4190_s19 = scalar_lea.hbm %s5686_s20, 256 }
  0x28   : > { %p4191_p13 = scmp.ne.s32.totalorder %s5686_s20, %s4190_s19  ;;  %p4197_p4 = scmp.lt.u32.totalorder %s4190_s19, %s5686_s20 }
  0x29   : > { %s5687_s16 = scalar_select %p4876_p0, 1, 0 }
  0x2a   : > { %p4193_p1 = pnand %p4876_p0, %p4191_p13 }
  0x2c   : > { %p4194_p2 = pneg %p4193_p1 }
  0x2e   : > { %p4199_p5 = pnand %p4197_p4, %p4194_p2 }
  0x30   : > { %4202 = shalt.err (!%p4199_p5)
}
  0x31   : > { %s4203_s21 = scalar_lea.vmem %s583_s4, 256  ;;  %p4211_p3 = scmp.lt.s32.totalorder %s583_s4, %s583_s4 }
  0x32   : > { %p4204_p6 = scmp.ne.s32.totalorder %s583_s4, %s4203_s21  ;;  %p4212_p7 = scmp.lt.s32.totalorder %s4203_s21, %s4203_s21 }
  0x34   : > { %p4206_p9 = pnand %p4204_p6, %p4876_p0  ;;  %p4213_p8 = por %p4212_p7, %p4211_p3 }
  0x36   : > { %p4207_p11 = pneg %p4206_p9 }
  0x38   : > { %p4214_p12 = pnand %p4213_p8, %p4207_p11 }
  0x3a   : > { %4217 = shalt.err (!%p4214_p12)
}
  0x3b   : > { %s4669_s18 = smov 128   ;;  %s4670_s12 = smov 8  }
  0x3c   : > { %3984 = dma.hbm_to_vmem [thread:$0]  (!%p4858_p10), %s5686_s20, 256, %s583_s4, [#allocation4], %s4669_s18, %s4669_s18, %s4670_s12  }
  0x3d   : > { %s43_s1 = sadd.s32 1, %s4662_s2  ;;  %s662_s28 = sand.u32 1, %s4666_s25  }
  0x3e   : > { %p44_p13 = scmp.ge.s32.totalorder %s43_s1, 2  ;;  %s4895_s21 = sand.u32 1, %s4654_s23  }
  0x3f   : > { %s4898_s10 = sshll.u32 %s4662_s2, 4  ;;  %s5689_s5 = sld [smem:[#allocation39_spill]] }
  0x40   : > { %s5753_s1 = smov (%p44_p13, %s43_s1), 0  ;;  %s665_s18 = scalar_lea.vmem [#allocation11], %s4895_s21 }
  0x41   : > { %5688 = sst [smem:[#allocation32_spill]] %s5753_s1  ;;  %s170_s4 = ssub.s32 %s4662_s2, %s5753_s1 }
  0x42   : > { %s672_s12 = sshll.u32 %s665_s18, 4  ;;  %p4911_p3 = scmp.eq.s32.totalorder %s170_s4, 0  ;;  %s4915_s12 = int_to_ptr.vmem [resolvable:$true] %s672_s12 }
  0x43   : > { %s4917_s30 = scalar_lea.sflag [#allocation4], %s662_s28  ;;  %p5691_p8 = scmp.ne.s32.totalorder %s5685_s0, 0 }
  0x44   : > { %s5690_s19 = scalar_select %p4911_p3, 1, 0 }
  0x45   : > { %s4906_s26 = scalar_lea.hbm %s5689_s5, %s4898_s10  ;;  %p4923_p12 = pneg %p5691_p8 }
  0x46   : > { %s4218_s20 = scalar_lea.hbm %s4906_s26, 16  ;;  %s4223_s18 = scalar_lea.hbm %s5689_s5, 32 }
  0x47   : > { %p4219_p7 = scmp.ne.s32.totalorder %s4906_s26, %s4218_s20  ;;  %p4224_p4 = scmp.lt.u32.totalorder %s4906_s26, %s5689_s5 }
  0x48   : > { %s5692_s6 = scalar_select %p4923_p12, 1, 0 }
  0x49   : > { %p4221_p1 = pnand %p4923_p12, %p4219_p7  ;;  %p4225_p5 = scmp.lt.u32.totalorder %s4223_s18, %s4218_s20 }
  0x4a   : > { %p4227_p9 = scmp.lt.u32.totalorder %s4218_s20, %s4906_s26 }
  0x4b   : > { %p4222_p2 = pneg %p4221_p1  ;;  %p4226_p6 = por %p4225_p5, %p4224_p4 }
  0x4d   : > { %p4228_p11 = por %p4227_p9, %p4226_p6 }
  0x4f   : > { %p4229_p13 = pnand %p4228_p11, %p4222_p2 }
  0x51   : > { %4232 = shalt.err (!%p4229_p13)
}
  0x52   : > { %s4233_s28 = scalar_lea.vmem %s4915_s12, 16  ;;  %s4671_s24 = smov [#allocation11]  }
  0x53   : > { %p4234_p7 = scmp.ne.s32.totalorder %s4915_s12, %s4233_s28  ;;  %s4238_s4 = sshll.u32 %s4671_s24, 4  ;;  %s4239_s4 = int_to_ptr.vmem [resolvable:$false] %s4238_s4 }
  0x54   : > { %s4240_s2 = scalar_lea.vmem %s4239_s4, 32  ;;  %p4241_p0 = scmp.lt.s32.totalorder %s4915_s12, %s4239_s4 }
  0x55   : > { %p4236_p1 = pnand %p4234_p7, %p4923_p12  ;;  %p4242_p3 = scmp.lt.s32.totalorder %s4240_s2, %s4233_s28 }
  0x57   : > { %p4237_p10 = pneg %p4236_p1  ;;  %p4243_p4 = por %p4242_p3, %p4241_p0 }
  0x59   : > { %p4244_p5 = pnand %p4243_p4, %p4237_p10 }
  0x5b   : > { %4247 = shalt.err (!%p4244_p5)
}
  0x5c   : > { %4000 = dma.hbm_to_vmem [thread:$0]  (!%p5691_p8), %s4906_s26, 16, %s4915_s12, %s4917_s30  }
  0x5d   : > { %s5693_s20 = sadd.s32 1, %s4654_s23  ;;  %p5694_p2 = scmp.ne.s32.totalorder %s5690_s19, 0 }
  0x5e   : > { %s5696_s7 = sld [smem:[#allocation41_spill]]  ;;  %s690_s4 = scalar_lea.vmem [#allocation12], %s4895_s21 }
  0x5f   : > { %s4952_s1 = scalar_select %p5694_p2, %s4654_s23, %s5693_s20  }
  0x60   : > { %s697_s2 = sshll.u32 %s690_s4, 4  ;;  %s5697_s8 = sld [smem:[#allocation42_spill]]  ;;  %s698_s2 = int_to_ptr.vmem [resolvable:$true] %s697_s2 }
  0x61   : > { %5695 = sst [smem:[#allocation33_spill]] %s4952_s1 }
  0x64   : > { %s4958_s24 = scalar_lea.hbm %s5696_s7, %s4898_s10  ;;  %s4253_s18 = scalar_lea.hbm %s5696_s7, 32 }
  0x65   : > { %s4248_s12 = scalar_lea.hbm %s4958_s24, 16  ;;  %p4254_p6 = scmp.lt.u32.totalorder %s4958_s24, %s5696_s7 }
  0x66   : > { %s4965_s26 = scalar_lea.hbm %s5697_s8, %s4898_s10  ;;  %p4249_p10 = scmp.ne.s32.totalorder %s4958_s24, %s4248_s12 }
  0x67   : > { %p4255_p9 = scmp.lt.u32.totalorder %s4253_s18, %s4248_s12  ;;  %p4257_p13 = scmp.lt.u32.totalorder %s4248_s12, %s4958_s24 }
  0x68   : > { %p4251_p0 = pnand %p4249_p10, %p4923_p12 }
  0x69   : > { %p4256_p11 = por %p4255_p9, %p4254_p6 }
  0x6a   : > { %p4252_p3 = pneg %p4251_p0 }
  0x6b   : > { %p4258_p7 = por %p4257_p13, %p4256_p11 }
  0x6d   : > { %p4259_p1 = pnand %p4258_p7, %p4252_p3 }
  0x6f   : > { %4262 = shalt.err (!%p4259_p1)
}
  0x70   : > { %s4263_s5 = scalar_lea.vmem %s698_s2, 16  ;;  %s4672_s25 = smov [#allocation12]  }
  0x71   : > { %p4264_p4 = scmp.ne.s32.totalorder %s698_s2, %s4263_s5  ;;  %s4268_s4 = sshll.u32 %s4672_s25, 4  ;;  %s4269_s4 = int_to_ptr.vmem [resolvable:$false] %s4268_s4 }
  0x72   : > { %s4270_s19 = scalar_lea.vmem %s4269_s4, 32  ;;  %p4271_p10 = scmp.lt.s32.totalorder %s698_s2, %s4269_s4 }
  0x73   : > { %p4266_p5 = pnand %p4264_p4, %p4923_p12  ;;  %p4272_p0 = scmp.lt.s32.totalorder %s4270_s19, %s4263_s5 }
  0x75   : > { %p4267_p2 = pneg %p4266_p5  ;;  %p4273_p8 = por %p4272_p0, %p4271_p10 }
  0x77   : > { %p4274_p6 = pnand %p4273_p8, %p4267_p2 }
  0x79   : > { %4277 = shalt.err (!%p4274_p6)
}
  0x7a   : > { %p5698_p9 = scmp.ne.s32.totalorder %s5685_s0, 0  ;;  %s707_s1 = scalar_lea.vmem [#allocation13], %s4895_s21 }
  0x7b   : > { %s714_s12 = sshll.u32 %s707_s1, 4  ;;  %s4990_s28 = scalar_lea.hbm %s5621_s9, %s4898_s10  ;;  %s715_s12 = int_to_ptr.vmem [resolvable:$true] %s714_s12 }
  0x7c   : > { %4003 = dma.hbm_to_vmem [thread:$0]  (!%p5698_p9), %s4958_s24, 16, %s698_s2, %s4917_s30  }
  0x7d   : > { %s4278_s5 = scalar_lea.hbm %s4965_s26, 16  ;;  %s4283_s19 = scalar_lea.hbm %s5697_s8, 32 }
  0x7e   : > { %p4279_p8 = scmp.ne.s32.totalorder %s4965_s26, %s4278_s5  ;;  %p4284_p13 = scmp.lt.u32.totalorder %s4965_s26, %s5697_s8 }
  0x7f   : > { %p4285_p7 = scmp.lt.u32.totalorder %s4283_s19, %s4278_s5  ;;  %p4287_p4 = scmp.lt.u32.totalorder %s4278_s5, %s4965_s26 }
  0x80   : > { %p4281_p3 = pnand %p4279_p8, %p4923_p12 }
  0x81   : > { %p4286_p1 = por %p4285_p7, %p4284_p13 }
  0x82   : > { %p4282_p11 = pneg %p4281_p3 }
  0x83   : > { %p4288_p5 = por %p4287_p4, %p4286_p1 }
  0x85   : > { %p4289_p2 = pnand %p4288_p5, %p4282_p11 }
  0x87   : > { %4292 = shalt.err (!%p4289_p2)
}
  0x88   : > { %s4293_s24 = scalar_lea.vmem %s715_s12, 16  ;;  %s4673_s2 = smov [#allocation13]  }
  0x89   : > { %p4294_p10 = scmp.ne.s32.totalorder %s715_s12, %s4293_s24  ;;  %s4298_s1 = sshll.u32 %s4673_s2, 4  ;;  %s4299_s1 = int_to_ptr.vmem [resolvable:$false] %s4298_s1 }
  0x8a   : > { %s4300_s20 = scalar_lea.vmem %s4299_s1, 32  ;;  %p4301_p8 = scmp.lt.s32.totalorder %s715_s12, %s4299_s1 }
  0x8b   : > { %p4296_p0 = pnand %p4294_p10, %p4923_p12  ;;  %p4302_p3 = scmp.lt.s32.totalorder %s4300_s20, %s4293_s24 }
  0x8d   : > { %p4297_p6 = pneg %p4296_p0  ;;  %p4303_p9 = por %p4302_p3, %p4301_p8 }
  0x8f   : > { %p4304_p7 = pnand %p4303_p9, %p4297_p6 }
  0x91   : > { %4307 = shalt.err (!%p4304_p7)
}
  0x92   : > { %p5699_p13 = scmp.ne.s32.totalorder %s5685_s0, 0  ;;  %s724_s7 = scalar_lea.vmem [#allocation14], %s4895_s21 }
  0x93   : > { %s731_s23 = sshll.u32 %s724_s7, 4  ;;  %s5015_s25 = scalar_lea.hbm %s5623_s11, %s4898_s10  ;;  %s732_s23 = int_to_ptr.vmem [resolvable:$true] %s731_s23 }
  0x94   : > { %4006 = dma.hbm_to_vmem [thread:$0]  (!%p5699_p13), %s4965_s26, 16, %s715_s12, %s4917_s30  }
  0x95   : > { %s4308_s4 = scalar_lea.hbm %s4990_s28, 16  ;;  %s4313_s2 = scalar_lea.hbm %s5621_s9, 32 }
  0x96   : > { %p4309_p9 = scmp.ne.s32.totalorder %s4990_s28, %s4308_s4  ;;  %p4314_p4 = scmp.lt.u32.totalorder %s4990_s28, %s5621_s9 }
  0x97   : > { %p4315_p5 = scmp.lt.u32.totalorder %s4313_s2, %s4308_s4  ;;  %p4317_p10 = scmp.lt.u32.totalorder %s4308_s4, %s4990_s28 }
  0x98   : > { %p4311_p11 = pnand %p4309_p9, %p4923_p12 }
  0x99   : > { %p4316_p2 = por %p4315_p5, %p4314_p4 }
  0x9a   : > { %p4312_p1 = pneg %p4311_p11 }
  0x9b   : > { %p4318_p0 = por %p4317_p10, %p4316_p2 }
  0x9d   : > { %p4319_p6 = pnand %p4318_p0, %p4312_p1 }
  0x9f   : > { %4322 = shalt.err (!%p4319_p6)
}
  0xa0   : > { %s4323_s26 = scalar_lea.vmem %s732_s23, 16  ;;  %s4674_s12 = smov [#allocation14]  }
  0xa1   : > { %p4324_p8 = scmp.ne.s32.totalorder %s732_s23, %s4323_s26  ;;  %s4328_s7 = sshll.u32 %s4674_s12, 4  ;;  %s4329_s7 = int_to_ptr.vmem [resolvable:$false] %s4328_s7 }
  0xa2   : > { %s4330_s18 = scalar_lea.vmem %s4329_s7, 32  ;;  %p4331_p9 = scmp.lt.s32.totalorder %s732_s23, %s4329_s7 }
  0xa3   : > { %p4326_p3 = pnand %p4324_p8, %p4923_p12  ;;  %p4332_p11 = scmp.lt.s32.totalorder %s4330_s18, %s4323_s26 }
  0xa5   : > { %p4327_p7 = pneg %p4326_p3  ;;  %p4333_p13 = por %p4332_p11, %p4331_p9 }
  0xa7   : > { %p4334_p4 = pnand %p4333_p13, %p4327_p7 }
  0xa9   : > { %4337 = shalt.err (!%p4334_p4)
}
  0xaa   : > { %p5700_p5 = scmp.ne.s32.totalorder %s5685_s0, 0  ;;  %s749_s5 = scalar_lea.vmem [#allocation15], %s4895_s21 }
  0xab   : > { %s756_s4 = sshll.u32 %s749_s5, 4  ;;  %s4675_s19 = smov [#allocation6]   ;;  %s5036_s4 = int_to_ptr.vmem [resolvable:$true] %s756_s4 }
  0xac   : > { %4009 = dma.hbm_to_vmem [thread:$0]  (!%p5700_p5), %s4990_s28, 16, %s732_s23, %s4917_s30  }
  0xad   : > { %s598_s24 = sshll.u32 %s4675_s19, 4  ;;  %s4338_s2 = scalar_lea.hbm %s5015_s25, 16  ;;  %s599_s24 = int_to_ptr.vmem [resolvable:$true] %s598_s24 }
  0xae   : > { %p4339_p13 = scmp.ne.s32.totalorder %s5015_s25, %s4338_s2  ;;  %s4343_s26 = scalar_lea.hbm %s5623_s11, 32 }
  0xaf   : > { %p4344_p10 = scmp.lt.u32.totalorder %s5015_s25, %s5623_s11  ;;  %p4345_p0 = scmp.lt.u32.totalorder %s4343_s26, %s4338_s2 }
  0xb0   : > { %p4341_p1 = pnand %p4339_p13, %p4923_p12  ;;  %p4347_p8 = scmp.lt.u32.totalorder %s4338_s2, %s5015_s25 }
  0xb1   : > { %p4346_p6 = por %p4345_p0, %p4344_p10 }
  0xb2   : > { %p4342_p2 = pneg %p4341_p1 }
  0xb3   : > { %p4348_p3 = por %p4347_p8, %p4346_p6 }
  0xb5   : > { %p4349_p7 = pnand %p4348_p3, %p4342_p2 }
  0xb7   : > { %4352 = shalt.err (!%p4349_p7)
}
  0xb8   : > { %s4353_s28 = scalar_lea.vmem %s5036_s4, 16  ;;  %s4676_s23 = smov [#allocation15]  }
  0xb9   : > { %p4354_p9 = scmp.ne.s32.totalorder %s5036_s4, %s4353_s28  ;;  %s4358_s18 = sshll.u32 %s4676_s23, 4  ;;  %s4359_s18 = int_to_ptr.vmem [resolvable:$false] %s4358_s18 }
  0xba   : > { %s4360_s5 = scalar_lea.vmem %s4359_s18, 32  ;;  %p4361_p13 = scmp.lt.s32.totalorder %s5036_s4, %s4359_s18 }
  0xbb   : > { %p4356_p11 = pnand %p4354_p9, %p4923_p12  ;;  %p4362_p1 = scmp.lt.s32.totalorder %s4360_s5, %s4353_s28 }
  0xbd   : > { %p4357_p4 = pneg %p4356_p11  ;;  %p4363_p10 = por %p4362_p1, %p4361_p13 }
  0xbf   : > { %p4364_p0 = pnand %p4363_p10, %p4357_p4 }
  0xc1   : > { %4367 = shalt.err (!%p4364_p0)
}
  0xc2   : > { %4012 = dma.hbm_to_vmem [thread:$0]  (!%p5700_p5), %s5015_s25, 16, %s5036_s4, %s4917_s30  }
  0xc3   : > { %s5701_s1 = sld [smem:[#allocation35_spill]]  ;;  %p5703_p6 = scmp.ne.s32.totalorder %s5687_s16, 0 }
  0xc9   : > { %s5702_s20 = smov %s5701_s1  ;;  %s4368_s26 = scalar_lea.hbm %s5701_s1, 32 }
  0xca   : > { %p4369_p2 = scmp.ne.s32.totalorder %s5702_s20, %s4368_s26  ;;  %p4375_p7 = scmp.lt.u32.totalorder %s4368_s26, %s5702_s20 }
  0xcc   : > { %p4371_p8 = pnand %p4369_p2, %p5703_p6 }
  0xce   : > { %p4372_p3 = pneg %p4371_p8 }
  0xd0   : > { %p4377_p9 = pnand %p4375_p7, %p4372_p3 }
  0xd2   : > { %4380 = shalt.err (!%p4377_p9)
}
  0xd3   : > { %s4381_s18 = scalar_lea.vmem %s599_s24, 32  ;;  %p4389_p1 = scmp.lt.s32.totalorder %s599_s24, %s599_s24 }
  0xd4   : > { %p4382_p11 = scmp.ne.s32.totalorder %s599_s24, %s4381_s18  ;;  %p4390_p10 = scmp.lt.s32.totalorder %s4381_s18, %s4381_s18 }
  0xd6   : > { %p4384_p4 = pnand %p4382_p11, %p5703_p6  ;;  %p4391_p0 = por %p4390_p10, %p4389_p1 }
  0xd8   : > { %p4385_p13 = pneg %p4384_p4 }
  0xda   : > { %p4392_p5 = pnand %p4391_p0, %p4385_p13 }
  0xdc   : > { %4395 = shalt.err (!%p4392_p5)
}
  0xdd   : > { %s4677_s25 = smov 16   ;;  %s4678_s4 = smov 1  }
  0xde   : > { %p5704_p2 = scmp.ne.s32.totalorder %s5684_s29, 0  ;;  %s5082_s26 = scalar_lea.hbm %s5625_s13, %s4898_s10 }
  0xdf   : > { %s774_s12 = scalar_lea.vmem [#allocation16], %s4895_s21  ;;  %s4396_s28 = scalar_lea.hbm %s5082_s26, 16 }
  0xe0   : > { %3987 = dma.hbm_to_vmem [thread:$0]  (!%p5704_p2), %s5702_s20, 32, %s599_s24, [#allocation7], %s4677_s25, %s4677_s25, %s4678_s4  }
  0xe1   : > { %s781_s7 = sshll.u32 %s774_s12, 4  ;;  %p4397_p5 = scmp.ne.s32.totalorder %s5082_s26, %s4396_s28  ;;  %s782_s7 = int_to_ptr.vmem [resolvable:$true] %s781_s7 }
  0xe2   : > { %s4401_s24 = scalar_lea.hbm %s5625_s13, 32  ;;  %p4402_p7 = scmp.lt.u32.totalorder %s5082_s26, %s5625_s13 }
  0xe3   : > { %p4399_p8 = pnand %p4397_p5, %p4923_p12  ;;  %p4403_p9 = scmp.lt.u32.totalorder %s4401_s24, %s4396_s28 }
  0xe4   : > { %p4405_p4 = scmp.lt.u32.totalorder %s4396_s28, %s5082_s26 }
  0xe5   : > { %p4400_p3 = pneg %p4399_p8  ;;  %p4404_p11 = por %p4403_p9, %p4402_p7 }
  0xe7   : > { %p4406_p13 = por %p4405_p4, %p4404_p11 }
  0xe9   : > { %p4407_p1 = pnand %p4406_p13, %p4400_p3 }
  0xeb   : > { %4410 = shalt.err (!%p4407_p1)
}
  0xec   : > { %s4411_s5 = scalar_lea.vmem %s782_s7, 16  ;;  %s4679_s19 = smov [#allocation16]  }
  0xed   : > { %p4412_p10 = scmp.ne.s32.totalorder %s782_s7, %s4411_s5  ;;  %s4416_s2 = sshll.u32 %s4679_s19, 4  ;;  %s4417_s2 = int_to_ptr.vmem [resolvable:$false] %s4416_s2 }
  0xee   : > { %s4418_s1 = scalar_lea.vmem %s4417_s2, 32  ;;  %p4419_p8 = scmp.lt.s32.totalorder %s782_s7, %s4417_s2 }
  0xef   : > { %p4414_p0 = pnand %p4412_p10, %p4923_p12  ;;  %p4420_p2 = scmp.lt.s32.totalorder %s4418_s1, %s4411_s5 }
  0xf1   : > { %p4415_p5 = pneg %p4414_p0  ;;  %p4421_p6 = por %p4420_p2, %p4419_p8 }
  0xf3   : > { %p4422_p7 = pnand %p4421_p6, %p4415_p5 }
  0xf5   : > { %4425 = shalt.err (!%p4422_p7)
}
  0xf6   : > { %p5705_p9 = scmp.ne.s32.totalorder %s5685_s0, 0  ;;  %s4680_s12 = smov [#allocation8]  }
  0xf7   : > { %s612_s28 = sshll.u32 %s4680_s12, 4  ;;  %s5107_s24 = scalar_lea.hbm %s5626_s14, %s4898_s10  ;;  %s613_s28 = int_to_ptr.vmem [resolvable:$true] %s612_s28 }
  0xf8   : > { %4015 = dma.hbm_to_vmem [thread:$0]  (!%p5705_p9), %s5082_s26, 16, %s782_s7, %s4917_s30  }
  0xf9   : > { %s5706_s5 = sld [smem:[#allocation36_spill]]  ;;  %p5707_p2 = scmp.ne.s32.totalorder %s5687_s16, 0 }
  0xff   : > { %s4426_s19 = scalar_lea.hbm %s5706_s5, 16 }
 0x100   : > { %p4427_p6 = scmp.ne.s32.totalorder %s5706_s5, %s4426_s19  ;;  %p4433_p4 = scmp.lt.u32.totalorder %s4426_s19, %s5706_s5 }
 0x102   : > { %p4429_p3 = pnand %p4427_p6, %p5707_p2 }
 0x104   : > { %p4430_p11 = pneg %p4429_p3 }
 0x106   : > { %p4435_p13 = pnand %p4433_p4, %p4430_p11 }
 0x108   : > { %4438 = shalt.err (!%p4435_p13)
}
 0x109   : > { %s4439_s12 = scalar_lea.vmem %s613_s28, 16  ;;  %s4446_s23 = scalar_lea.vmem %s613_s28, 32 }
 0x10a   : > { %p4440_p1 = scmp.ne.s32.totalorder %s613_s28, %s4439_s12  ;;  %p4447_p5 = scmp.lt.s32.totalorder %s613_s28, %s613_s28 }
 0x10b   : > { %p4448_p8 = scmp.lt.s32.totalorder %s4446_s23, %s4439_s12 }
 0x10c   : > { %p4442_p10 = pnand %p4440_p1, %p5707_p2 }
 0x10d   : > { %p4449_p7 = por %p4448_p8, %p4447_p5 }
 0x10e   : > { %p4443_p0 = pneg %p4442_p10 }
 0x110   : > { %p4450_p9 = pnand %p4449_p7, %p4443_p0 }
 0x112   : > { %4453 = shalt.err (!%p4450_p9)
}
 0x113   : > { %p5708_p6 = scmp.ne.s32.totalorder %s5684_s29, 0  ;;  %s791_s4 = scalar_lea.vmem [#allocation17], %s4895_s21 }
 0x114   : > { %s798_s19 = sshll.u32 %s791_s4, 4  ;;  %s4681_s2 = smov [#allocation9]   ;;  %s5128_s19 = int_to_ptr.vmem [resolvable:$true] %s798_s19 }
 0x115   : > { %3990 = dma.hbm_to_vmem [thread:$0]  (!%p5708_p6), %s5706_s5, 16, %s613_s28, [#allocation7]  }
 0x116   : > { %s623_s1 = sshll.u32 %s4681_s2, 4  ;;  %s4454_s26 = scalar_lea.hbm %s5107_s24, 16  ;;  %s624_s1 = int_to_ptr.vmem [resolvable:$true] %s623_s1 }
 0x117   : > { %p4455_p9 = scmp.ne.s32.totalorder %s5107_s24, %s4454_s26  ;;  %s4459_s23 = scalar_lea.hbm %s5626_s14, 32 }
 0x118   : > { %p4460_p4 = scmp.lt.u32.totalorder %s5107_s24, %s5626_s14  ;;  %p4461_p13 = scmp.lt.u32.totalorder %s4459_s23, %s4454_s26 }
 0x119   : > { %p4457_p3 = pnand %p4455_p9, %p4923_p12  ;;  %p4463_p10 = scmp.lt.u32.totalorder %s4454_s26, %s5107_s24 }
 0x11a   : > { %p4462_p1 = por %p4461_p13, %p4460_p4 }
 0x11b   : > { %p4458_p11 = pneg %p4457_p3 }
 0x11c   : > { %p4464_p0 = por %p4463_p10, %p4462_p1 }
 0x11e   : > { %p4465_p5 = pnand %p4464_p0, %p4458_p11 }
 0x120   : > { %4468 = shalt.err (!%p4465_p5)
}
 0x121   : > { %s4469_s28 = scalar_lea.vmem %s5128_s19, 16  ;;  %s4682_s4 = smov [#allocation17]  }
 0x122   : > { %p4470_p8 = scmp.ne.s32.totalorder %s5128_s19, %s4469_s28  ;;  %s4474_s2 = sshll.u32 %s4682_s4, 4  ;;  %s4475_s2 = int_to_ptr.vmem [resolvable:$false] %s4474_s2 }
 0x123   : > { %s4476_s7 = scalar_lea.vmem %s4475_s2, 32  ;;  %p4477_p3 = scmp.lt.s32.totalorder %s5128_s19, %s4475_s2 }
 0x124   : > { %p4472_p7 = pnand %p4470_p8, %p4923_p12  ;;  %p4478_p6 = scmp.lt.s32.totalorder %s4476_s7, %s4469_s28 }
 0x126   : > { %p4473_p9 = pneg %p4472_p7  ;;  %p4479_p4 = por %p4478_p6, %p4477_p3 }
 0x128   : > { %p4480_p13 = pnand %p4479_p4, %p4473_p9 }
 0x12a   : > { %4483 = shalt.err (!%p4480_p13)
}
 0x12b   : > { %p5709_p11 = scmp.ne.s32.totalorder %s5685_s0, 0  ;;  %s5710_s23 = sld [smem:[#allocation37_spill]] }
 0x12d   : > { %4018 = dma.hbm_to_vmem [thread:$0]  (!%p5709_p11), %s5107_s24, 16, %s5128_s19, %s4917_s30  }
 0x131   : > { %s5711_s18 = smov %s5710_s23  ;;  %s4484_s25 = scalar_lea.hbm %s5710_s23, 16 }
 0x132   : > { %p4485_p1 = scmp.ne.s32.totalorder %s5711_s18, %s4484_s25  ;;  %p4491_p0 = scmp.lt.u32.totalorder %s4484_s25, %s5711_s18 }
 0x134   : > { %p4487_p6 = pnand %p4485_p1, %p5707_p2 }
 0x136   : > { %p4488_p10 = pneg %p4487_p6 }
 0x138   : > { %p4493_p5 = pnand %p4491_p0, %p4488_p10 }
 0x13a   : > { %4496 = shalt.err (!%p4493_p5)
}
 0x13b   : > { %s4497_s7 = scalar_lea.vmem %s624_s1, 16  ;;  %s4504_s24 = scalar_lea.vmem %s624_s1, 32 }
 0x13c   : > { %p4498_p8 = scmp.ne.s32.totalorder %s624_s1, %s4497_s7  ;;  %p4505_p3 = scmp.lt.s32.totalorder %s624_s1, %s624_s1 }
 0x13d   : > { %p4506_p4 = scmp.lt.s32.totalorder %s4504_s24, %s4497_s7 }
 0x13e   : > { %p4500_p7 = pnand %p4498_p8, %p5707_p2 }
 0x13f   : > { %p4507_p13 = por %p4506_p4, %p4505_p3 }
 0x140   : > { %p4501_p9 = pneg %p4500_p7 }
 0x142   : > { %p4508_p11 = pnand %p4507_p13, %p4501_p9 }
 0x144   : > { %4511 = shalt.err (!%p4508_p11)
}
 0x145   : > { %p5712_p1 = scmp.ne.s32.totalorder %s5684_s29, 0  ;;  %s4683_s26 = smov [#allocation19]  }
 0x146   : > { %s637_s12 = sshll.u32 %s4683_s26, 4  ;;  %s5174_s4 = scalar_lea.hbm %s5627_s15, %s4898_s10  ;;  %s638_s12 = int_to_ptr.vmem [resolvable:$true] %s637_s12 }
 0x147   : > { %3993 = dma.hbm_to_vmem [thread:$0]  (!%p5712_p1), %s5711_s18, 16, %s624_s1, [#allocation10]  }
 0x148   : > { %s4512_s7 = scalar_lea.hbm %s5629_s17, 16 }
 0x149   : > { %p4513_p11 = scmp.ne.s32.totalorder %s5629_s17, %s4512_s7  ;;  %p4519_p0 = scmp.lt.u32.totalorder %s4512_s7, %s5629_s17 }
 0x14b   : > { %p4515_p6 = pnand %p4513_p11, %p5707_p2 }
 0x14d   : > { %p4516_p10 = pneg %p4515_p6 }
 0x14f   : > { %p4521_p5 = pnand %p4519_p0, %p4516_p10 }
 0x151   : > { %4524 = shalt.err (!%p4521_p5)
}
 0x152   : > { %s4525_s19 = scalar_lea.vmem %s638_s12, 16  ;;  %s4532_s10 = scalar_lea.vmem %s638_s12, 32 }
 0x153   : > { %p4526_p8 = scmp.ne.s32.totalorder %s638_s12, %s4525_s19  ;;  %p4533_p3 = scmp.lt.s32.totalorder %s638_s12, %s638_s12 }
 0x154   : > { %p4534_p4 = scmp.lt.s32.totalorder %s4532_s10, %s4525_s19 }
 0x155   : > { %p4528_p7 = pnand %p4526_p8, %p5707_p2 }
 0x156   : > { %p4535_p13 = por %p4534_p4, %p4533_p3 }
 0x157   : > { %p4529_p9 = pneg %p4528_p7 }
 0x159   : > { %p4536_p12 = pnand %p4535_p13, %p4529_p9 }
 0x15b   : > { %4539 = shalt.err (!%p4536_p12)
}
 0x15c   : > { %3996 = dma.hbm_to_vmem [thread:$0]  (!%p5712_p1), %s5629_s17, 16, %s638_s12, [#allocation7]  }
 0x15d   : > { %s808_s16 = scalar_lea.vmem [#allocation18], %s4895_s21  ;;  %s4540_s25 = scalar_lea.hbm %s5174_s4, 16 }
 0x15e   : > { %s815_s23 = sshll.u32 %s808_s16, 4  ;;  %p4541_p2 = scmp.ne.s32.totalorder %s5174_s4, %s4540_s25  ;;  %s816_s23 = int_to_ptr.vmem [resolvable:$true] %s815_s23 }
 0x15f   : > { %p5713_p11 = scmp.ne.s32.totalorder %s5692_s6, 0  ;;  %s4545_s2 = scalar_lea.hbm %s5627_s15, 32 }
 0x160   : > { %p4546_p10 = scmp.lt.u32.totalorder %s5174_s4, %s5627_s15  ;;  %p4547_p0 = scmp.lt.u32.totalorder %s4545_s2, %s4540_s25 }
 0x161   : > { %p4543_p6 = pnand %p4541_p2, %p5713_p11  ;;  %p4549_p8 = scmp.lt.u32.totalorder %s4540_s25, %s5174_s4 }
 0x162   : > { %p4548_p5 = por %p4547_p0, %p4546_p10 }
 0x163   : > { %p4544_p12 = pneg %p4543_p6 }
 0x164   : > { %p4550_p1 = por %p4549_p8, %p4548_p5 }
 0x166   : > { %p4551_p7 = pnand %p4550_p1, %p4544_p12 }
 0x168   : > { %4554 = shalt.err (!%p4551_p7)
}
 0x169   : > { %s4555_s21 = scalar_lea.vmem %s816_s23, 16  ;;  %s4684_s12 = smov [#allocation18]  }
 0x16a   : > { %p4556_p9 = scmp.ne.s32.totalorder %s816_s23, %s4555_s21  ;;  %s4560_s1 = sshll.u32 %s4684_s12, 4  ;;  %s4561_s1 = int_to_ptr.vmem [resolvable:$false] %s4560_s1 }
 0x16b   : > { %s4562_s5 = scalar_lea.vmem %s4561_s1, 32  ;;  %p4563_p13 = scmp.lt.s32.totalorder %s816_s23, %s4561_s1 }
 0x16c   : > { %p4558_p3 = pnand %p4556_p9, %p5713_p11  ;;  %p4564_p2 = scmp.lt.s32.totalorder %s4562_s5, %s4555_s21 }
 0x16e   : > { %p4559_p4 = pneg %p4558_p3  ;;  %p4565_p6 = por %p4564_p2, %p4563_p13 }
 0x170   : > { %p4566_p0 = pnand %p4565_p6, %p4559_p4 }
 0x172   : > { %4569 = shalt.err (!%p4566_p0)
}
 0x173   : > { %p5714_p10 = scmp.ne.s32.totalorder %s5685_s0, 0  ;;  %p5715_p12 = scmp.ne.s32.totalorder %s5683_s27, 0 }
 0x174   : > { %p5716_p11 = scmp.eq.s32.totalorder (!%p5715_p12), %s4835_s3, 0 }
 0x175   : > { %4021 = dma.hbm_to_vmem [thread:$0]  (!%p5714_p10), %s5174_s4, 16, %s816_s23, %s4917_s30  }
 0x176   : > { %824 = sbr.rel (%p5715_p12) target bundleno = 4760 (0x1298), region = 100 }
 0x17d   : > { %4621 = dma.done.wait (%p5716_p11), [#allocation4], 256   ;;  %p5717_p5 = pmov %p5716_p11 }
 0x17f   : > { %4623 = vsyncadd (%p5717_p5), [#allocation4], 4294967040  ;;  %p5718_p8 = pmov %p5717_p5 }
 0x180   : > { %p5719_p1 = pmov %p5717_p5 }
 0x181   : > { %4625 = dma.done.wait (%p5718_p8), [#allocation7], 48  }
 0x182   : > { %4627 = vsyncadd (%p5719_p1), [#allocation7], 4294967248  ;;  %p5720_p7 = pmov %p5719_p1 }
 0x183   : > { %p5721_p9 = pmov %p5719_p1 }
 0x184   : > { %4629 = dma.done.wait (%p5720_p7), [#allocation10], 16  }
 0x185   : > { %4631 = vsyncadd (%p5721_p9), [#allocation10], 4294967280  ;;  %s5722_s27 = sld [smem:[#allocation31_spill]]  ;;  %s842_s0 = sand.u32 1, %s4835_s3  }
 0x186   : > { %s5229_s30 = sand.u32 1, %s4650_s22   ;;  %s843_s6 = scalar_lea.sflag [#allocation4], %s842_s0 }
 0x18b   : > { %p5723_p3 = scmp.ne.s32.totalorder %s5722_s27, 0 }
 0x18d   : > { %4633 = dma.done.wait (%p5723_p3), %s843_s6, 128  }
 0x18e   : > { %4635 = vsyncadd (%p5723_p3), %s843_s6, 4294967168  ;;  %p5724_p4 = pmov %p5719_p1 }
 0x18f   : > { %p5725_p13 = pmov %p5719_p1 }
 0x190   : > { %4637 = dma.done.wait (%p5724_p4), [#allocation7], 16  }
 0x191   : > { %4639 = vsyncadd (%p5725_p13), [#allocation7], 4294967280  ;;  %s5726_s28 = sld [smem:[#allocation28_spill]]  ;;  %s5728_s0 = sld [smem:[#allocation40_spill]] }
 0x192   : > { %s5727_s12 = sld [smem:[#allocation38_spill]]  ;;  %s5729_s16 = sld [smem:[#allocation43_spill]] }
 0x193   : > { %s5730_s19 = sld [smem:[#allocation44_spill]] }
 0x197   : > { %p1006_p2 = scmp.lt.s32.totalorder %s5726_s28, 1  ;;  %p3677_p6 = scmp.ne.s32.totalorder %s5726_s28, 0 }
 0x198   : > { %v1031_v0 = vld [vmem:[#allocation3] sm:$0xff] (!%p3677_p6)  ;;  %vm1035_vm0 = vcmask (!%p3677_p6), 261120   ;;  %v1032_v1 = vld [vmem:[#allocation3 + $0x8] sm:$0xff] (!%p3677_p6)  ;;  %v4685_v14 = vmov (!%p3677_p6), 0.0   ;;  %v3678_v22 = vld [vmem:[#allocation8] ss:$0 sm:$0xff] (!%p3677_p6) }
 0x199   : > { %s1007_s29 = scalar_select %p1006_p2, %s5726_s28, 1 }
 0x19a   : > { %1030 = sbr.rel (%p3677_p6) target bundleno = 728 (0x2d8), region = 156  ;;  %v1036_v2 = vsel (!%p3677_p6), %vm1035_vm0, %v1031_v0, 0.0  ;;  %v1039_v3 = vsel (!%p3677_p6), %vm1035_vm0, %v1032_v1, 0.0  ;;  %1081 = vst [vmem:[#allocation20] sm:$0x3] (!%p3677_p6), %v4685_v14 }
 0x19b   : > { %s3737_s2 = sshll.u32 %s1007_s29, 4  ;;  %s3740_s7 = sshll.u32 %s1007_s29, 5  ;;  %1037 = vadd.xlane.f32.xlu0 (!%p3677_p6), %v1036_v2  ;;  %v3679_v24 = vld [vmem:[#allocation9] ss:$0 sm:$0xff] (!%p3677_p6) }
 0x19c   : > { %s5252_s1 = scalar_lea.vmem %s5727_s12, %s3737_s2  ;;  %s5257_s6 = scalar_lea.vmem %s5728_s0, %s3737_s2 }
 0x19d   : > { %s5262_s26 = scalar_lea.vmem %s5729_s16, %s3737_s2  ;;  %s5267_s4 = scalar_lea.vmem %s5730_s19, %s3740_s7 }
 0x19f   : > { %1040 = vadd.xlane.f32.xlu0 (!%p3677_p6), %v1039_v3 }
 0x228   : > { %v1038_v4 = vpop.xlane.xlu0 %1037 }
 0x229   : > { %v1043_v5 = vmul.f32 0.03125, %v1038_v4 }
 0x22b   : > { %v1045_v6 = vsub.f32 %v1031_v0, %v1043_v5 }
 0x22c   : > { %v1041_v7 = vpop.xlane.xlu0 %1040 }
 0x22d   : > { %v1044_v8 = vmul.f32 0.03125, %v1041_v7  ;;  %v1047_v9 = vmul.f32 %v1045_v6, %v1045_v6 }
 0x22f   : > { %v1046_v10 = vsub.f32 %v1032_v1, %v1044_v8  ;;  %v1049_v11 = vsel %vm1035_vm0, %v1047_v9, 0.0 }
 0x230   : > { %1050 = vadd.xlane.f32.xlu1 %v1049_v11 }
 0x231   : > { %v1048_v12 = vmul.f32 %v1046_v10, %v1046_v10 }
 0x233   : > { %v1052_v13 = vsel %vm1035_vm0, %v1048_v12, 0.0 }
 0x234   : > { %1053 = vadd.xlane.f32.xlu1 %v1052_v13 }
 0x2bd   : > { %v1051_v15 = vpop.xlane.xlu1 %1050 }
 0x2be   : > { %v1055_v16 = vmul.f32 0.03125, %v1051_v15 }
 0x2c0   : > { %v1057_v17 = vadd.f32 1e-07, %v1055_v16 }
 0x2c1   : > { %v1054_v18 = vpop.xlane.xlu1 %1053 }
 0x2c2   : > { %4109 = vrsqrt.f32 %v1057_v17  ;;  %v1056_v19 = vmul.f32 0.03125, %v1054_v18 }
 0x2c4   : > { %v1058_v20 = vadd.f32 1e-07, %v1056_v19 }
 0x2c6   : > { %4111 = vrsqrt.f32 %v1058_v20 }
 0x2cc   : > { %v4110_v21 = vpop.eup %4109 }
 0x2cd   : > { %v1061_v23 = vmul.f32 %v4110_v21, %v1045_v6 }
 0x2cf   : > { %v1069_v25 = vmul.f32 %v3678_v22, %v1061_v23 }
 0x2d0   : > { %v4112_v26 = vpop.eup %4111 }
 0x2d1   : > { %v1077_v27 = vadd.f32 %v3679_v24, %v1069_v25  ;;  %v1062_v28 = vmul.f32 %v4112_v26, %v1046_v10 }
 0x2d3   : > { %1079 = vst.msk [vmem:[#allocation2] sm:$0xff] %vm1035_vm0, %v1077_v27  ;;  %v1070_v29 = vmul.f32 %v3678_v22, %v1062_v28 }
 0x2d5   : > { %v1078_v30 = vadd.f32 %v3679_v24, %v1070_v29 }
 0x2d7   : > { %1080 = vst.msk [vmem:[#allocation2 + $0x8] sm:$0xff] %vm1035_vm0, %v1078_v30 }
 0x2d8 PF: > { %v4128_v31 = vld [vmem:[%s5252_s1] sm:$0xff]   ;;  %v4686_v32 = vmov 0.0   ;;  %v4129_v33 = vld [vmem:[%s5252_s1 + $0x8] sm:$0xff]   ;;  %vm4687_vm1 = vmmov 0   ;;  %vm1108_vm2 = vcmask 261120   ;;  %s5731_s19 = scalar_lea.vmem [#allocation11], %s5229_s30 }
 0x2d9   : > { %3793 = vmatprep.subr.bf16.mxu0 %v4686_v32  ;;  %3801 = vmatprep.subr.bf16.mxu1 %v4686_v32  ;;  %v3680_v37 = vld [vmem:[%s5731_s19] ss:$0 sm:$0xff]  ;;  %s4688_s10 = smov 104   ;;  %s4689_s8 = smov 120   ;;  %vm1249_vm3 = vcmask 1043456   ;;  %vm1245_vm4 = vcmask 64512  }
 0x2da   : > { %3794 = vmatpush3.bf16.msra.mxu0 %v4128_v31  ;;  %3797 = vmatprep.mubr.msk.bf16.mxu0 %vm4687_vm1, %v4686_v32  ;;  %v1082_v34 = vld [vmem:[#allocation2] sm:$0xff]  ;;  %s4690_s16 = smov 96   ;;  %s4691_s23 = smov 112   ;;  %vm2016_vm5 = vcmask 130048   ;;  %vm2018_vm6 = vcmask 195584   ;;  %vm3118_vm7 = vcmask 523264  }
 0x2db   : > { %3795 = vmatprep.subr.bf16.mxu0 %v4686_v32  ;;  %3803 = vmatprep.mubr.msk.bf16.mxu1 %vm4687_vm1, %v4686_v32  ;;  %v3684_v60 = vld [vmem:[#allocation6] ss:$0 sm:$0xff]  ;;  %s4692_s25 = smov 64   ;;  %s4695_s28 = smov 16  }
 0x2dc   : > { %s4696_s29 = smov 8   ;;  %s4697_s2 = smov 24  }
 0x2dd   : > { %s5732_s7 = scalar_lea.vmem [#allocation12], %s5229_s30  ;;  %s5733_s24 = scalar_lea.vmem [#allocation13], %s5229_s30 }
 0x2de   : > { %v1083_v35 = vld [vmem:[#allocation2 + $0x8] sm:$0xff]  ;;  %3796 = vmatpush3.bf16.msra.mxu0 %v4129_v33  ;;  %s5735_s21 = scalar_lea.vmem [#allocation15], %s5229_s30  ;;  %s5737_s12 = scalar_lea.vmem [#allocation17], %s5229_s30 }
 0x2df   : > { %v1084_v36 = vpack.c.bf16 %v1083_v35, %v1082_v34  ;;  %3825 = vmatprep.subr.bf16.mxu0 %v4686_v32  ;;  %s5738_s1 = scalar_lea.vmem [#allocation18], %s5229_s30  ;;  %s5739_s5 = sld [smem:[#allocation28_spill]] }
 0x2e1   : > { %3798 = vmatmul.mubr.msk.bf16.vlgmr.msra.gmra.mrb[0].mxu0 %vm1108_vm2, %v1084_v36 }
 0x2e2   : > { %3827 = vmatprep.mubr.msk.bf16.mxu0 %vm4687_vm1, %v4686_v32 }
 0x2e5   : > { %p3724_p0 = scmp.ne.s32.totalorder %s5739_s5, 1 }
 0x2e6   : > { %vm4699_vm8 = vmmov (!%p3724_p0), 0   ;;  %vm3235_vm9 = vcmask (!%p3724_p0), 1041409  }
 0x3b4   : > { %v1146_v38 = vpop.f32.mrb[0].mxu0 }
 0x3b5   : > { %v3799_v39 = vpop.f32.mrb[1].mxu0  ;;  %v1147_v41 = vadd.f32 %v3680_v37, %v1146_v38 }
 0x3b6   : > { %v1149_v40 = vpop.f32.mrb[2].mxu0 }
 0x3b7   : > { %v1150_v42 = vadd.f32 %v3680_v37, %v1149_v40  ;;  %v3800_v43 = vpop.f32.mrb[3].mxu0 }
 0x3b9   : > { %v5291_v44 = vpack.c.bf16 %v1150_v42, %v1147_v41 }
 0x3bb   : > { %1161 = vrot.lane.b32.xlu1 %v5291_v44, %s4688_s10  ;;  %1157 = vrot.lane.b32.xlu0 %v5291_v44, %s4689_s8  ;;  %v5345_v21 = vrot.slane %v5291_v44, 4 }
 0x3bf   : > { %1169 = vrot.lane.b32.xlu1 %v5291_v44, %s4690_s16  ;;  %1159 = vrot.lane.b32.xlu0 %v5291_v44, %s4691_s23 }
 0x42d   : > { %v5298_v45 = vpop.permute.xlu0 %1157  ;;  %v5302_v46 = vpop.permute.xlu1 %1161 }
 0x42e   : > { %1171 = vrot.lane.b32.xlu0 %v5298_v45, %s4690_s16  ;;  %v5352_v22 = vrot.slane %v5298_v45, 4 }
 0x431   : > { %v5304_v47 = vpop.permute.xlu0 %1159  ;;  %v1170_v48 = vpop.permute.xlu1 %1169 }
 0x432   : > { %1175 = vrot.lane.b32.xlu0 %v5302_v46, %s4690_s16  ;;  %1173 = vrot.lane.b32.xlu1 %v5304_v47, %s4690_s16 }
 0x455   : > { %1181 = vxpose.xlu1.c.b16.start.end [1/1] (short) (narrow) %v1170_v48, 16 }
 0x4a0   : > { %v1172_v49 = vpop.permute.xlu0 %1171 }
 0x4a1   : > { %1197 = vxpose.xlu0.c.b16.start.end [1/1] (short) (narrow) %v1172_v49, 16 }
 0x4a4   : > { %v1174_v50 = vpop.permute.xlu1 %1173  ;;  %v1176_v51 = vpop.permute.xlu0 %1175 }
 0x4a5   : > { %1213 = vxpose.xlu0.c.b16.start.end [1/1] (short) (narrow) %v1174_v50, 16  ;;  %1229 = vxpose.xlu1.c.b16.start.end [1/1] (short) (narrow) %v1176_v51, 16 }
 0x4bb   : > { %v1189_v52 = vpop.trf.xlu1 }
 0x4bc   : > { %v1251_v53 = vsel %vm1249_vm3, %v1189_v52, 0 }
 0x4bd   : > { %3802 = vmatpush3.bf16.msra.mxu1 %v1251_v53 }
 0x4be   : > { %3807 = vmatprep.subr.bf16.mxu1 %v4686_v32 }
 0x4c0   : > { %3804 = vmatmul.mubr.msk.bf16.vlgmr.msra.gmra.mrb[0].mxu1 %vm1245_vm4, %v5291_v44 }
 0x4c1   : > { %3809 = vmatprep.mubr.msk.bf16.mxu1 %vm4687_vm1, %v4686_v32 }
 0x507   : > { %v1205_v54 = vpop.trf.xlu0 }
 0x508   : > { %v1297_v55 = vsel %vm1249_vm3, %v1205_v54, 0 }
 0x509   : > { %3808 = vmatpush3.bf16.msra.mxu1 %v1297_v55 }
 0x50a   : > { %3813 = vmatprep.subr.bf16.mxu1 %v4686_v32 }
 0x50b   : > { %v1221_v56 = vpop.trf.xlu0  ;;  %v1237_v58 = vpop.trf.xlu1 }
 0x50c   : > { %3810 = vmatmul.mubr.msk.bf16.vlgmr.msra.gmra.mrb[4].mxu1 %vm1245_vm4, %v5298_v45  ;;  %v1343_v57 = vsel %vm1249_vm3, %v1221_v56, 0  ;;  %v1389_v59 = vsel %vm1249_vm3, %v1237_v58, 0 }
 0x50d   : > { %3814 = vmatpush3.bf16.msra.mxu1 %v1343_v57  ;;  %3815 = vmatprep.mubr.msk.bf16.mxu1 %vm4687_vm1, %v4686_v32 }
 0x50e   : > { %3819 = vmatprep.subr.bf16.mxu1 %v4686_v32 }
 0x514   : > { %3816 = vmatmul.mubr.msk.bf16.vlgmr.msra.gmra.mrb[8].mxu1 %vm1245_vm4, %v5304_v47 }
 0x515   : > { %3820 = vmatpush3.bf16.msra.mxu1 %v1389_v59  ;;  %3821 = vmatprep.mubr.msk.bf16.mxu1 %vm4687_vm1, %v4686_v32 }
 0x516   : > { %3831 = vmatprep.subr.bf16.mxu1 %v4686_v32 }
 0x51c   : > { %3822 = vmatmul.mubr.msk.bf16.vlgmr.msra.gmra.mrb[12].mxu1 %vm1245_vm4, %v5302_v46 }
 0x51d   : > { %3833 = vmatprep.mubr.msk.bf16.mxu1 %vm4687_vm1, %v4686_v32 }
 0x593   : > { %v1287_v61 = vpop.f32.mrb[0].mxu1 }
 0x594   : > { %v1288_v62 = vadd.f32 %v3684_v60, %v1287_v61  ;;  %v3805_v63 = vpop.f32.mrb[1].mxu1 }
 0x595   : > { %v1290_v0 = vpop.f32.mrb[2].mxu1 }
 0x596   : > { %v3806_v1 = vpop.f32.mrb[3].mxu1  ;;  %v1431_v2 = vsel %vm1245_vm4, %v1288_v62, -inf }
 0x597   : > { %1432 = vmax.xlane.f32.xlu0 %v1431_v2 }
 0x5df   : > { %v1333_v3 = vpop.f32.mrb[4].mxu1 }
 0x5e0   : > { %v1334_v4 = vadd.f32 %v3684_v60, %v1333_v3  ;;  %v3811_v5 = vpop.f32.mrb[5].mxu1 }
 0x5e1   : > { %v1336_v6 = vpop.f32.mrb[6].mxu1 }
 0x5e2   : > { %v3812_v7 = vpop.f32.mrb[7].mxu1  ;;  %v1434_v8 = vsel %vm1245_vm4, %v1334_v4, -inf }
 0x5e3   : > { %1435 = vmax.xlane.f32.xlu1 %v1434_v8 }
 0x5e7   : > { %v1379_v9 = vpop.f32.mrb[8].mxu1 }
 0x5e8   : > { %v1380_v10 = vadd.f32 %v3684_v60, %v1379_v9  ;;  %v3817_v11 = vpop.f32.mrb[9].mxu1 }
 0x5e9   : > { %v1382_v12 = vpop.f32.mrb[10].mxu1 }
 0x5ea   : > { %v3818_v13 = vpop.f32.mrb[11].mxu1  ;;  %v1437_v14 = vsel %vm1245_vm4, %v1380_v10, -inf }
 0x5eb   : > { %1438 = vmax.xlane.f32.xlu0 %v1437_v14 }
 0x5ef   : > { %v1425_v15 = vpop.f32.mrb[12].mxu1 }
 0x5f0   : > { %v1426_v16 = vadd.f32 %v3684_v60, %v1425_v15  ;;  %v3823_v17 = vpop.f32.mrb[13].mxu1 }
 0x5f1   : > { %v1428_v18 = vpop.f32.mrb[14].mxu1 }
 0x5f2   : > { %v3824_v19 = vpop.f32.mrb[15].mxu1  ;;  %v1440_v20 = vsel %vm1245_vm4, %v1426_v16, -inf }
 0x5f3   : > { %1441 = vmax.xlane.f32.xlu1 %v1440_v20 }
 0x601   : > { %1479 = vrot.lane.b32.xlu0 %v5291_v44, %s4692_s25  ;;  %v5361_v44 = vrot.slane %v5304_v47, 4 }
 0x604   : > { %1481 = vrot.lane.b32.xlu1 %v5298_v45, %s4692_s25  ;;  %v5366_v45 = vrot.slane %v5302_v46, 4 }
 0x605   : > { %1483 = vrot.lane.b32.xlu0 %v5304_v47, %s4692_s25 }
 0x608   : > { %1485 = vrot.lane.b32.xlu1 %v5302_v46, %s4692_s25 }
 0x609   : > { %2030 = vrot.lane.b32.xlu0 %v5345_v21, %s4690_s16 }
 0x60c   : > { %2032 = vrot.lane.b32.xlu1 %v5352_v22, %s4690_s16 }
 0x624   : > { %v1433_v23 = vpop.xlane.xlu0 %1432 }
 0x625   : > { %v1443_v24 = vsub.f32 %v1288_v62, %v1433_v23 }
 0x627   : > { %v1447_v25 = vmul.f32 1.442695, %v1443_v24 }
 0x629   : > { %4138 = vpow2.f32 %v1447_v25 }
 0x633   : > { %v4139_v26 = vpop.eup %4138 }
 0x634   : > { %v1455_v27 = vsel %vm1245_vm4, %v4139_v26, 0.0 }
 0x635   : > { %1456 = vadd.xlane.f32.xlu1 %v1455_v27 }
 0x670   : > { %v1436_v28 = vpop.xlane.xlu1 %1435 }
 0x671   : > { %v1444_v29 = vsub.f32 %v1334_v4, %v1436_v28 }
 0x673   : > { %v1449_v30 = vmul.f32 1.442695, %v1444_v29 }
 0x675   : > { %4140 = vpow2.f32 %v1449_v30 }
 0x678   : > { %v1439_v31 = vpop.xlane.xlu0 %1438 }
 0x679   : > { %v1445_v33 = vsub.f32 %v1380_v10, %v1439_v31 }
 0x67b   : > { %v1451_v34 = vmul.f32 1.442695, %v1445_v33 }
 0x67c   : > { %v1480_v50 = vpop.permute.xlu0 %1479 }
 0x67d   : > { %4142 = vpow2.f32 %v1451_v34 }
 0x67f   : > { %v4141_v35 = vpop.eup %4140 }
 0x680   : > { %v1442_v36 = vpop.xlane.xlu1 %1441  ;;  %v1458_v37 = vsel %vm1245_vm4, %v4141_v35, 0.0  ;;  %v1484_v47 = vpop.permute.xlu0 %1483 }
 0x681   : > { %v1446_v38 = vsub.f32 %v1426_v16, %v1442_v36  ;;  %1459 = vadd.xlane.f32.xlu0 %v1458_v37 }
 0x683   : > { %v1453_v39 = vmul.f32 1.442695, %v1446_v38  ;;  %v3695_v38 = vld [vmem:[#allocation6 + $0x1] ss:$0 sm:$0xff] }
 0x684   : > { %v1482_v48 = vpop.permute.xlu1 %1481  ;;  %v2031_v53 = vpop.permute.xlu0 %2030 }
 0x685   : > { %4144 = vpow2.f32 %v1453_v39 }
 0x687   : > { %v4143_v40 = vpop.eup %4142 }
 0x688   : > { %v1461_v41 = vsel %vm1245_vm4, %v4143_v40, 0.0  ;;  %v1486_v49 = vpop.permute.xlu1 %1485 }
 0x689   : > { %1462 = vadd.xlane.f32.xlu1 %v1461_v41 }
 0x68c   : > { %v2033_v51 = vpop.permute.xlu1 %2032 }
 0x68f   : > { %v4145_v42 = vpop.eup %4144 }
 0x690   : > { %v1464_v43 = vsel %vm1245_vm4, %v4145_v42, 0.0 }
 0x691   : > { %1465 = vadd.xlane.f32.xlu0 %v1464_v43 }
 0x69a   : > { %2034 = vrot.lane.b32.xlu1 %v5361_v44, %s4690_s16 }
 0x6a7   : > { %2036 = vrot.lane.b32.xlu0 %v5366_v45, %s4690_s16  ;;  %s5741_s16 = sld [smem:[#allocation46_spill]] (!%p3724_p0) }
 0x6bd   : > { %1491 = vxpose.xlu1.c.b16.start.end [1/1] (short) (narrow) %v1480_v50, 16 }
 0x6c1   : > { %1539 = vxpose.xlu1.c.b16.start.end [1/1] (short) (narrow) %v1486_v49, 16 }
 0x6c2   : > { %v1457_v52 = vpop.xlane.xlu1 %1456 }
 0x6c3   : > { %4146 = vrcp.f32 %v1457_v52 }
 0x6c5   : > { %2058 = vxpose.xlu1.c.b16.start.end [1/1] (short) (narrow) %v2033_v51, 16  ;;  %1507 = vxpose.xlu0.c.b16.start.end [1/1] (short) (narrow) %v1482_v48, 16 }
 0x6c9   : > { %1523 = vxpose.xlu0.c.b16.start.end [1/1] (short) (narrow) %v1484_v47, 16 }
 0x6cd   : > { %v4147_v54 = vpop.eup %4146  ;;  %2042 = vxpose.xlu0.c.b16.start.end [1/1] (short) (narrow) %v2031_v53, 16 }
 0x6ce   : > { %v1471_v46 = vmul.f32 %v4147_v54, %v4139_v26 }
 0x6d0   : > { %v1475_v55 = vpack.c.bf16 %v1471_v46, %v1471_v46 }
 0x6d2   : > { %v1559_v56 = vsel %vm1245_vm4, %v1475_v55, 0 }
 0x6d3   : > { %3826 = vmatpush3.bf16.xpose.msra.mxu0 %v1559_v56 }
 0x6d4   : > { %3837 = vmatprep.subr.bf16.mxu0 %v4686_v32 }
 0x70e   : > { %v1460_v57 = vpop.xlane.xlu0 %1459 }
 0x70f   : > { %4148 = vrcp.f32 %v1460_v57 }
 0x716   : > { %v1463_v58 = vpop.xlane.xlu1 %1462 }
 0x717   : > { %4150 = vrcp.f32 %v1463_v58 }
 0x719   : > { %v4149_v59 = vpop.eup %4148 }
 0x71a   : > { %v2035_v60 = vpop.permute.xlu1 %2034  ;;  %v1472_v61 = vmul.f32 %v4149_v59, %v4141_v35 }
 0x71b   : > { %2074 = vxpose.xlu0.c.b16.start.end [1/1] (short) (narrow) %v2035_v60, 16 }
 0x71c   : > { %v1476_v62 = vpack.c.bf16 %v1472_v61, %v1472_v61 }
 0x71e   : > { %v1466_v63 = vpop.xlane.xlu0 %1465  ;;  %v1605_v0 = vsel %vm1245_vm4, %v1476_v62, 0 }
 0x71f   : > { %4152 = vrcp.f32 %v1466_v63  ;;  %3832 = vmatpush3.bf16.xpose.msra.mxu1 %v1605_v0 }
 0x720   : > { %3843 = vmatprep.subr.bf16.mxu1 %v4686_v32 }
 0x721   : > { %v4151_v1 = vpop.eup %4150 }
 0x722   : > { %v2037_v2 = vpop.permute.xlu0 %2036  ;;  %v1473_v3 = vmul.f32 %v4151_v1, %v4143_v40 }
 0x723   : > { %2090 = vxpose.xlu1.c.b16.start.end [1/1] (short) (narrow) %v2037_v2, 16  ;;  %v1499_v4 = vpop.trf.xlu1 }
 0x724   : > { %3828 = vmatmul.mubr.msk.bf16.vlgmr.msra.gmra.mrb[4].mxu0 %vm1245_vm4, %v1499_v4  ;;  %v1477_v5 = vpack.c.bf16 %v1473_v3, %v1473_v3 }
 0x725   : > { %3839 = vmatprep.mubr.msk.bf16.mxu0 %vm4687_vm1, %v4686_v32 }
 0x726   : > { %v1651_v6 = vsel %vm1245_vm4, %v1477_v5, 0 }
 0x727   : > { %3838 = vmatpush3.bf16.xpose.msra.mxu0 %v1651_v6  ;;  %v1547_v10 = vpop.trf.xlu1 }
 0x728   : > { %3849 = vmatprep.subr.bf16.mxu0 %v4686_v32 }
 0x729   : > { %v4153_v7 = vpop.eup %4152 }
 0x72a   : > { %v1474_v8 = vmul.f32 %v4153_v7, %v4145_v42 }
 0x72b   : > { %v1515_v9 = vpop.trf.xlu0  ;;  %v2066_v14 = vpop.trf.xlu1 }
 0x72c   : > { %3834 = vmatmul.mubr.msk.bf16.vlgmr.msra.gmra.mrb[16].mxu1 %vm1245_vm4, %v1515_v9  ;;  %v1478_v11 = vpack.c.bf16 %v1474_v8, %v1474_v8  ;;  %v2156_v17 = vsel %vm1249_vm3, %v2066_v14, 0 }
 0x72d   : > { %3845 = vmatprep.mubr.msk.bf16.mxu1 %vm4687_vm1, %v4686_v32 }
 0x72e   : > { %v1697_v12 = vsel %vm1245_vm4, %v1478_v11, 0 }
 0x72f   : > { %3844 = vmatpush3.bf16.xpose.msra.mxu1 %v1697_v12  ;;  %v1531_v13 = vpop.trf.xlu0 }
 0x730   : > { %3840 = vmatmul.mubr.msk.bf16.vlgmr.msra.gmra.mrb[8].mxu0 %vm1245_vm4, %v1531_v13  ;;  %3855 = vmatprep.subr.bf16.mxu1 %v4686_v32 }
 0x731   : > { %3851 = vmatprep.mubr.msk.bf16.mxu0 %vm4687_vm1, %v4686_v32 }
 0x733   : > { %v2050_v15 = vpop.trf.xlu0 }
 0x734   : > { %v2110_v16 = vsel %vm1249_vm3, %v2050_v15, 0 }
 0x735   : > { %3850 = vmatpush3.bf16.msra.mxu0 %v2110_v16 }
 0x736   : > { %3846 = vmatmul.mubr.msk.bf16.vlgmr.msra.gmra.mrb[20].mxu1 %vm1245_vm4, %v1547_v10  ;;  %3861 = vmatprep.subr.bf16.mxu0 %v4686_v32 }
 0x737   : > { %3856 = vmatpush3.bf16.msra.mxu1 %v2156_v17  ;;  %3857 = vmatprep.mubr.msk.bf16.mxu1 %vm4687_vm1, %v4686_v32 }
 0x738   : > { %3852 = vmatmul.mubr.msk.bf16.vlgmr.msra.gmra.mrb[12].mxu0 %vm1245_vm4, %v5345_v21  ;;  %3867 = vmatprep.subr.bf16.mxu1 %v4686_v32 }
 0x739   : > { %3863 = vmatprep.mubr.msk.bf16.mxu0 %vm4687_vm1, %v4686_v32 }
 0x73e   : > { %3858 = vmatmul.mubr.msk.bf16.vlgmr.msra.gmra.mrb[24].mxu1 %vm1245_vm4, %v5352_v22 }
 0x73f   : > { %3869 = vmatprep.mubr.msk.bf16.mxu1 %vm4687_vm1, %v4686_v32 }
 0x781   : > { %v2082_v18 = vpop.trf.xlu0 }
 0x782   : > { %v2202_v19 = vsel %vm1249_vm3, %v2082_v18, 0 }
 0x783   : > { %3862 = vmatpush3.bf16.msra.mxu0 %v2202_v19 }
 0x784   : > { %3873 = vmatprep.subr.bf16.mxu0 %v4686_v32 }
 0x786   : > { %3864 = vmatmul.mubr.msk.bf16.vlgmr.msra.gmra.mrb[16].mxu0 %vm1245_vm4, %v5361_v44 }
 0x787   : > { %3875 = vmatprep.mubr.msk.bf16.mxu0 %vm4687_vm1, %v4686_v32 }
 0x789   : > { %v2098_v20 = vpop.trf.xlu1 }
 0x78a   : > { %v2248_v23 = vsel %vm1249_vm3, %v2098_v20, 0 }
 0x78b   : > { %3868 = vmatpush3.bf16.msra.mxu1 %v2248_v23 }
 0x78c   : > { %3879 = vmatprep.subr.bf16.mxu1 %v4686_v32 }
 0x78e   : > { %3870 = vmatmul.mubr.msk.bf16.vlgmr.msra.gmra.mrb[28].mxu1 %vm1245_vm4, %v5366_v45 }
 0x78f   : > { %3881 = vmatprep.mubr.msk.bf16.mxu1 %vm4687_vm1, %v4686_v32 }
 0x7f7   : > { %v5414_v24 = vpop.f32.mrb[4].mxu0 }
 0x7f8   : > { %v3829_v25 = vpop.f32.mrb[5].mxu0 }
 0x7f9   : > { %v1598_v26 = vpop.f32.mrb[6].mxu0 }
 0x7fa   : > { %v3830_v27 = vpop.f32.mrb[7].mxu0 }
 0x7ff   : > { %v5416_v28 = vpop.f32.mrb[16].mxu1 }
 0x800   : > { %v3835_v29 = vpop.f32.mrb[17].mxu1 }
 0x801   : > { %v1644_v30 = vpop.f32.mrb[18].mxu1 }
 0x802   : > { %v3836_v31 = vpop.f32.mrb[19].mxu1 }
 0x803   : > { %v5418_v33 = vpop.f32.mrb[8].mxu0 }
 0x804   : > { %v3841_v34 = vpop.f32.mrb[9].mxu0 }
 0x805   : > { %v1690_v35 = vpop.f32.mrb[10].mxu0 }
 0x806   : > { %v3842_v36 = vpop.f32.mrb[11].mxu0 }
 0x809   : > { %v5420_v37 = vpop.f32.mrb[20].mxu1 }
 0x80a   : > { %v3847_v39 = vpop.f32.mrb[21].mxu1 }
 0x80b   : > { %v1736_v40 = vpop.f32.mrb[22].mxu1  ;;  %v2146_v41 = vpop.f32.mrb[12].mxu0 }
 0x80c   : > { %v2147_v42 = vadd.f32 %v3695_v38, %v2146_v41  ;;  %v3848_v43 = vpop.f32.mrb[23].mxu1  ;;  %v3853_v48 = vpop.f32.mrb[13].mxu0 }
 0x80d   : > { %v2149_v49 = vpop.f32.mrb[14].mxu0 }
 0x80e   : > { %v3854_v50 = vpop.f32.mrb[15].mxu0  ;;  %v2290_v51 = vsel %vm1245_vm4, %v2147_v42, -inf }
 0x80f   : > { %2291 = vmax.xlane.f32.xlu0 %v2290_v51 }
 0x811   : > { %v2192_v52 = vpop.f32.mrb[24].mxu1 }
 0x812   : > { %v2193_v47 = vadd.f32 %v3695_v38, %v2192_v52  ;;  %v3859_v53 = vpop.f32.mrb[25].mxu1 }
 0x813   : > { %v2195_v54 = vpop.f32.mrb[26].mxu1 }
 0x814   : > { %v3860_v46 = vpop.f32.mrb[27].mxu1  ;;  %v2293_v55 = vsel %vm1245_vm4, %v2193_v47, -inf }
 0x815   : > { %2294 = vmax.xlane.f32.xlu1 %v2293_v55  ;;  %v4693_v46 = vmov 1983009808  }
 0x816   : > { %v1870_v55 = vunpack.c.l.s4 %v4693_v46 }
 0x859   : > { %v2238_v56 = vpop.f32.mrb[16].mxu0 }
 0x85a   : > { %v2239_v57 = vadd.f32 %v3695_v38, %v2238_v56  ;;  %v3865_v58 = vpop.f32.mrb[17].mxu0  ;;  %v1872_v56 = vlaneseq }
 0x85b   : > { %v2241_v59 = vpop.f32.mrb[18].mxu0  ;;  %v1871_v58 = vunpack.c.0.s8 %v1870_v55 }
 0x85c   : > { %v3866_v60 = vpop.f32.mrb[19].mxu0  ;;  %v2296_v61 = vsel %vm1245_vm4, %v2239_v57, -inf  ;;  %v1873_v59 = vshrl.u32 %v1872_v56, 7 }
 0x85d   : > { %2297 = vmax.xlane.f32.xlu0 %v2296_v61 }
 0x861   : > { %v2284_v62 = vpop.f32.mrb[28].mxu1 }
 0x862   : > { %v2285_v63 = vadd.f32 %v3695_v38, %v2284_v62  ;;  %v3871_v0 = vpop.f32.mrb[29].mxu1 }
 0x863   : > { %v2287_v1 = vpop.f32.mrb[30].mxu1 }
 0x864   : > { %v3872_v2 = vpop.f32.mrb[31].mxu1  ;;  %v2299_v3 = vsel %vm1245_vm4, %v2285_v63, -inf  ;;  %v5462_v1 = vsub.s32 %v1871_v58, %v1873_v59 }
 0x865   : > { %2300 = vmax.xlane.f32.xlu1 %v2299_v3  ;;  %v4694_v2 = vmov 1934713408  }
 0x866   : > { %v1902_v3 = vunpack.c.l.s4 %v4694_v2 }
 0x873   : > { %2338 = vrot.lane.b32.xlu0 %v5345_v21, %s4692_s25 }
 0x876   : > { %2340 = vrot.lane.b32.xlu1 %v5352_v22, %s4692_s25 }
 0x89c   : > { %v2292_v4 = vpop.xlane.xlu0 %2291 }
 0x89d   : > { %v2302_v5 = vsub.f32 %v2147_v42, %v2292_v4 }
 0x89f   : > { %v2306_v6 = vmul.f32 1.442695, %v2302_v5 }
 0x8a1   : > { %4154 = vpow2.f32 %v2306_v6 }
 0x8a2   : > { %v2295_v7 = vpop.xlane.xlu1 %2294 }
 0x8a3   : > { %v2303_v8 = vsub.f32 %v2193_v47, %v2295_v7 }
 0x8a5   : > { %v2308_v9 = vmul.f32 1.442695, %v2303_v8 }
 0x8a7   : > { %4156 = vpow2.f32 %v2308_v9  ;;  %v1903_v9 = vunpack.c.0.s8 %v1902_v3 }
 0x8ab   : > { %v4155_v10 = vpop.eup %4154 }
 0x8ac   : > { %v2314_v11 = vsel %vm1245_vm4, %v4155_v10, 0.0 }
 0x8ad   : > { %2315 = vadd.xlane.f32.xlu1 %v2314_v11 }
 0x8b1   : > { %v4157_v12 = vpop.eup %4156 }
 0x8b2   : > { %v2317_v13 = vsel %vm1245_vm4, %v4157_v12, 0.0 }
 0x8b3   : > { %2318 = vadd.xlane.f32.xlu0 %v2317_v13 }
 0x8be   : > { %2344 = vrot.lane.b32.xlu1 %v5366_v45, %s4692_s25 }
 0x8c9   : > { %2342 = vrot.lane.b32.xlu0 %v5361_v44, %s4692_s25 }
 0x8ea   : > { %v2298_v21 = vpop.xlane.xlu0 %2297 }
 0x8eb   : > { %v2304_v22 = vsub.f32 %v2239_v57, %v2298_v21 }
 0x8ed   : > { %v2310_v14 = vmul.f32 1.442695, %v2304_v22 }
 0x8ee   : > { %v2339_v25 = vpop.permute.xlu0 %2338 }
 0x8ef   : > { %4158 = vpow2.f32 %v2310_v14 }
 0x8f2   : > { %v2301_v15 = vpop.xlane.xlu1 %2300 }
 0x8f3   : > { %v2305_v16 = vsub.f32 %v2285_v63, %v2301_v15  ;;  %v5468_v15 = vsub.s32 %v1903_v9, %v1873_v59 }
 0x8f5   : > { %v2312_v17 = vmul.f32 1.442695, %v2305_v16 }
 0x8f6   : > { %v2341_v45 = vpop.permute.xlu1 %2340 }
 0x8f7   : > { %4160 = vpow2.f32 %v2312_v17 }
 0x8f9   : > { %v4159_v18 = vpop.eup %4158 }
 0x8fa   : > { %v2320_v19 = vsel %vm1245_vm4, %v4159_v18, 0.0 }
 0x8fb   : > { %2321 = vadd.xlane.f32.xlu1 %v2320_v19 }
 0x901   : > { %v4161_v20 = vpop.eup %4160 }
 0x902   : > { %v2323_v23 = vsel %vm1245_vm4, %v4161_v20, 0.0 }
 0x903   : > { %2324 = vadd.xlane.f32.xlu0 %v2323_v23 }
 0x928   : > { %2366 = vxpose.xlu1.c.b16.start.end [1/1] (short) (narrow) %v2341_v45, 16 }
 0x930   : > { %2350 = vxpose.xlu0.c.b16.start.end [1/1] (short) (narrow) %v2339_v25, 16 }
 0x93a   : > { %v2316_v44 = vpop.xlane.xlu1 %2315 }
 0x93b   : > { %4162 = vrcp.f32 %v2316_v44 }
 0x93e   : > { %v2345_v26 = vpop.permute.xlu1 %2344 }
 0x93f   : > { %2398 = vxpose.xlu1.c.b16.start.end [1/1] (short) (narrow) %v2345_v26, 16 }
 0x940   : > { %v2319_v27 = vpop.xlane.xlu0 %2318 }
 0x941   : > { %4164 = vrcp.f32 %v2319_v27 }
 0x944   : > { %v2343_v29 = vpop.permute.xlu0 %2342 }
 0x945   : > { %v4163_v30 = vpop.eup %4162  ;;  %2382 = vxpose.xlu0.c.b16.start.end [1/1] (short) (narrow) %v2343_v29, 16 }
 0x946   : > { %v2330_v31 = vmul.f32 %v4163_v30, %v4155_v10 }
 0x948   : > { %v2334_v34 = vpack.c.bf16 %v2330_v31, %v2330_v31 }
 0x949   : > { %1771 = vxpose.xlu1.b32.start.end [1/1] (short) (narrow) %v5416_v28, 8  ;;  %1739 = vxpose.xlu0.b32.start.end [1/1] (short) (narrow) %v5414_v24, 8 }
 0x94a   : > { %v2418_v35 = vsel %vm1245_vm4, %v2334_v34, 0 }
 0x94b   : > { %v4165_v36 = vpop.eup %4164  ;;  %3874 = vmatpush3.bf16.xpose.msra.mxu0 %v2418_v35 }
 0x94c   : > { %v2331_v38 = vmul.f32 %v4165_v36, %v4157_v12  ;;  %3885 = vmatprep.subr.bf16.mxu0 %v4686_v32 }
 0x94d   : > { %1803 = vxpose.xlu0.b32.start.end [1/1] (short) (narrow) %v5418_v33, 8 }
 0x94e   : > { %v2335_v39 = vpack.c.bf16 %v2331_v38, %v2331_v38 }
 0x950   : > { %v2464_v40 = vsel %vm1245_vm4, %v2335_v39, 0 }
 0x951   : > { %3880 = vmatpush3.bf16.xpose.msra.mxu1 %v2464_v40  ;;  %1835 = vxpose.xlu0.b32.start.end [1/1] (short) (narrow) %v5420_v37, 8 }
 0x952   : > { %3891 = vmatprep.subr.bf16.mxu1 %v4686_v32 }
 0x988   : > { %v2322_v28 = vpop.xlane.xlu1 %2321 }
 0x989   : > { %4166 = vrcp.f32 %v2322_v28 }
 0x98e   : > { %v2374_v24 = vpop.trf.xlu1 }
 0x98f   : > { %3882 = vmatmul.mubr.msk.bf16.vlgmr.msra.gmra.mrb[32].mxu1 %vm1245_vm4, %v2374_v24 }
 0x990   : > { %v2325_v41 = vpop.xlane.xlu0 %2324  ;;  %3893 = vmatprep.mubr.msk.bf16.mxu1 %vm4687_vm1, %v4686_v32 }
 0x991   : > { %4168 = vrcp.f32 %v2325_v41 }
 0x993   : > { %v4167_v42 = vpop.eup %4166 }
 0x994   : > { %v2332_v33 = vmul.f32 %v4167_v42, %v4159_v18 }
 0x996   : > { %v2358_v43 = vpop.trf.xlu0  ;;  %v2336_v48 = vpack.c.bf16 %v2332_v33, %v2332_v33 }
 0x997   : > { %3876 = vmatmul.mubr.msk.bf16.vlgmr.msra.gmra.mrb[20].mxu0 %vm1245_vm4, %v2358_v43 }
 0x998   : > { %v2510_v37 = vsel %vm1245_vm4, %v2336_v48, 0  ;;  %3887 = vmatprep.mubr.msk.bf16.mxu0 %vm4687_vm1, %v4686_v32 }
 0x999   : > { %3886 = vmatpush3.bf16.xpose.msra.mxu0 %v2510_v37 }
 0x99a   : > { %3897 = vmatprep.subr.bf16.mxu0 %v4686_v32 }
 0x99b   : > { %v4169_v49 = vpop.eup %4168 }
 0x99c   : > { %v2333_v50 = vmul.f32 %v4169_v49, %v4161_v20 }
 0x99e   : > { %v2337_v51 = vpack.c.bf16 %v2333_v50, %v2333_v50 }
 0x9a0   : > { %v2556_v52 = vsel %vm1245_vm4, %v2337_v51, 0 }
 0x9a1   : > { %3892 = vmatpush3.bf16.xpose.msra.mxu1 %v2556_v52 }
 0x9a2   : > { %3905 = vmatprep.subr.bf16.mxu1 %v4686_v32 }
 0x9a5   : > { %v2406_v47 = vpop.trf.xlu1 }
 0x9a8   : > { %3894 = vmatmul.mubr.msk.bf16.vlgmr.msra.gmra.mrb[36].mxu1 %vm1245_vm4, %v2406_v47 }
 0x9a9   : > { %3909 = vmatprep.mubr.msk.bf16.mxu1 %vm4687_vm1, %v4686_v32 }
 0x9ab   : > { %v2390_v53 = vpop.trf.xlu0 }
 0x9ac   : > { %3888 = vmatmul.mubr.msk.bf16.vlgmr.msra.gmra.mrb[24].mxu0 %vm1245_vm4, %v2390_v53 }
 0x9ad   : > { %3901 = vmatprep.mubr.msk.bf16.mxu0 %vm4687_vm1, %v4686_v32 }
 0x9c9   : > { %v1755_v54 = vpop.trf.xlu0  ;;  %v1787_v60 = vpop.trf.xlu1 }
 0x9cd   : > { %v1819_v57 = vpop.trf.xlu0 }
 0x9ce   : > { %v1867_v5 = vcombine.low %v1755_v54, %v1819_v57  ;;  %v1868_v6 = vcombine.high %v1755_v54, %v1819_v57 }
 0x9d0   : > { %v1875_v10 = vrot.slane %v1867_v5, %v5462_v1  ;;  %v1882_v11 = vrot.slane %v1868_v6, %v5462_v1 }
 0x9d1   : > { %v1851_v62 = vpop.trf.xlu0 }
 0x9d2   : > { %v1883_v7 = vcombine.low %v1787_v60, %v1851_v62  ;;  %v1884_v8 = vcombine.high %v1787_v60, %v1851_v62 }
 0x9d4   : > { %v1891_v12 = vrot.slane %v1883_v7, %v5462_v1  ;;  %v1898_v13 = vrot.slane %v1884_v8, %v5462_v1  ;;  %v4130_v8 = vld [vmem:[%s5257_s6] sm:$0xff]  }
 0x9d5   : > { %3898 = vmatpush3.bf16.msra.mxu0 %v4130_v8 }
 0x9d6   : > { %v1899_v17 = vcombine.low %v1875_v10, %v1891_v12  ;;  %v1900_v18 = vcombine.high %v1875_v10, %v1891_v12  ;;  %v1915_v19 = vcombine.low %v1882_v11, %v1898_v13  ;;  %v1916_v20 = vcombine.high %v1882_v11, %v1898_v13  ;;  %3899 = vmatprep.subr.bf16.mxu0 %v4686_v32 }
 0x9d8   : > { %v1907_v23 = vrot.slane %v1899_v17, %v5468_v15  ;;  %v1914_v45 = vrot.slane %v1900_v18, %v5468_v15  ;;  %v1923_v25 = vrot.slane %v1915_v19, %v5468_v15  ;;  %v1930_v44 = vrot.slane %v1916_v20, %v5468_v15  ;;  %v4131_v18 = vld [vmem:[%s5257_s6 + $0x8] sm:$0xff]   ;;  %s5740_s6 = sld [smem:[#allocation45_spill]] (!%p3724_p0) }
 0x9d9   : > { %3900 = vmatpush3.bf16.msra.mxu0 %v4131_v18 }
 0x9da   : > { %v1935_v26 = vcombine.low %v1907_v23, %v1914_v45  ;;  %v3693_v27 = vcombine.high %v1907_v23, %v1914_v45  ;;  %v1951_v29 = vcombine.low %v1923_v25, %v1930_v44  ;;  %v3694_v30 = vcombine.high %v1923_v25, %v1930_v44  ;;  %3913 = vmatprep.subr.bf16.mxu0 %v4686_v32 }
 0x9dc   : > { %v1942_v31 = vrot.slane %v1935_v26, %v5462_v1  ;;  %v1950_v34 = vrot.slane %v3693_v27, %v5462_v1  ;;  %v1958_v35 = vrot.slane %v1951_v29, %v5462_v1  ;;  %v1966_v36 = vrot.slane %v3694_v30, %v5462_v1 }
 0x9de   : > { %v1967_v28 = vcombine.low %v1942_v31, %v1950_v34  ;;  %v1983_v24 = vcombine.low %v1958_v35, %v1966_v36  ;;  %v1968_v6 = vcombine.high %v1942_v31, %v1950_v34  ;;  %v1984_v7 = vcombine.high %v1958_v35, %v1966_v36 }
 0x9e0   : > { %v5479_v33 = vrot.slane %v1967_v28, %v5468_v15  ;;  %v5482_v43 = vrot.slane %v1983_v24, %v5468_v15  ;;  %v1998_v17 = vrot.slane %v1984_v7, %v5468_v15 }
 0x9e2   : > { %v1999_v49 = vcombine.low %v5479_v33, %v5482_v43  ;;  %v2000_v30 = vcombine.high %v5479_v33, %v5482_v43  ;;  %v3706_v33 = vld [vmem:[%s5732_s7] ss:$0 sm:$0xff] }
 0xa62   : > { %v2500_v61 = vpop.f32.mrb[32].mxu1 }
 0xa63   : > { %v3883_v63 = vpop.f32.mrb[33].mxu1  ;;  %2630 = vxpose.xlu0.b32.start.end [1/1] (short) (narrow) %v2500_v61, 8 }
 0xa64   : > { %v2503_v0 = vpop.f32.mrb[34].mxu1 }
 0xa65   : > { %v3884_v4 = vpop.f32.mrb[35].mxu1 }
 0xa6a   : > { %v2454_v21 = vpop.f32.mrb[20].mxu0 }
 0xa6b   : > { %v3877_v22 = vpop.f32.mrb[21].mxu0  ;;  %2598 = vxpose.xlu1.b32.start.end [1/1] (short) (narrow) %v2454_v21, 8 }
 0xa6c   : > { %v2457_v14 = vpop.f32.mrb[22].mxu0 }
 0xa6d   : > { %v3878_v16 = vpop.f32.mrb[23].mxu0 }
 0xa6e   : > { %v1982_v16 = vrot.slane %v1968_v6, %v5468_v15 }
 0xa70   : > { %v2001_v27 = vcombine.low %v1982_v16, %v1998_v17 }
 0xa7b   : > { %v2592_v38 = vpop.f32.mrb[36].mxu1 }
 0xa7c   : > { %2694 = vxpose.xlu0.b32.start.end [1/1] (short) (narrow) %v2592_v38, 8  ;;  %v3895_v39 = vpop.f32.mrb[37].mxu1 }
 0xa7d   : > { %v2595_v40 = vpop.f32.mrb[38].mxu1  ;;  %v2002_v39 = vcombine.high %v1982_v16, %v1998_v17 }
 0xa7e   : > { %v3896_v41 = vpop.f32.mrb[39].mxu1 }
 0xa7f   : > { %v2546_v42 = vpop.f32.mrb[24].mxu0 }
 0xa80   : > { %2662 = vxpose.xlu1.b32.start.end [1/1] (short) (narrow) %v2546_v42, 8  ;;  %v3889_v48 = vpop.f32.mrb[25].mxu0 }
 0xa81   : > { %v2549_v37 = vpop.f32.mrb[26].mxu0 }
 0xa82   : > { %v3890_v50 = vpop.f32.mrb[27].mxu0 }
 0xae3   : > { %v2646_v51 = vpop.trf.xlu0 }
 0xaeb   : > { %v2614_v52 = vpop.trf.xlu1 }
 0xafc   : > { %v2710_v47 = vpop.trf.xlu0 }
 0xafd   : > { %v2742_v53 = vcombine.low %v2646_v51, %v2710_v47  ;;  %v2743_v54 = vcombine.high %v2646_v51, %v2710_v47 }
 0xaff   : > { %v2750_v57 = vrot.slane %v2742_v53, %v5462_v1  ;;  %v2757_v58 = vrot.slane %v2743_v54, %v5462_v1 }
 0xb00   : > { %v2678_v46 = vpop.trf.xlu1 }
 0xb01   : > { %v2726_v55 = vcombine.low %v2614_v52, %v2678_v46  ;;  %v2727_v56 = vcombine.high %v2614_v52, %v2678_v46 }
 0xb03   : > { %v2734_v59 = vrot.slane %v2726_v55, %v5462_v1  ;;  %v2741_v60 = vrot.slane %v2727_v56, %v5462_v1 }
 0xb05   : > { %v2758_v61 = vcombine.low %v2734_v59, %v2750_v57  ;;  %v2759_v62 = vcombine.high %v2734_v59, %v2750_v57  ;;  %v2774_v63 = vcombine.low %v2741_v60, %v2757_v58  ;;  %v2775_v0 = vcombine.high %v2741_v60, %v2757_v58 }
 0xb07   : > { %v2766_v2 = vrot.slane %v2758_v61, %v5468_v15  ;;  %v2773_v3 = vrot.slane %v2759_v62, %v5468_v15  ;;  %v2782_v4 = vrot.slane %v2774_v63, %v5468_v15  ;;  %v2789_v5 = vrot.slane %v2775_v0, %v5468_v15  ;;  %v4182_v61 = vld [vmem:[#allocation2] sm:$0xff]  ;;  %v4183_v0 = vld [vmem:[#allocation2 + $0x8] sm:$0xff] }
 0xb09   : > { %v2794_v9 = vcombine.low %v2766_v2, %v2773_v3  ;;  %v3704_v10 = vcombine.high %v2766_v2, %v2773_v3  ;;  %v2810_v11 = vcombine.low %v2782_v4, %v2789_v5  ;;  %v3705_v12 = vcombine.high %v2782_v4, %v2789_v5 }
 0xb0b   : > { %v2801_v13 = vrot.slane %v2794_v9, %v5462_v1  ;;  %v2809_v21 = vrot.slane %v3704_v10, %v5462_v1  ;;  %v2817_v22 = vrot.slane %v2810_v11, %v5462_v1  ;;  %v2825_v14 = vrot.slane %v3705_v12, %v5462_v1 }
 0xb0d   : > { %v2827_v19 = vcombine.high %v2801_v13, %v2809_v21  ;;  %v2843_v20 = vcombine.high %v2817_v22, %v2825_v14  ;;  %v2826_v23 = vcombine.low %v2801_v13, %v2809_v21  ;;  %v2842_v45 = vcombine.low %v2817_v22, %v2825_v14  ;;  %v4132_v21 = vld [vmem:[%s5262_s26] sm:$0xff]   ;;  %v4133_v22 = vld [vmem:[%s5262_s26 + $0x8] sm:$0xff]   ;;  %s5734_s26 = scalar_lea.vmem [#allocation14], %s5229_s30 }
 0xb0e   : > { %3906 = vmatpush3.bf16.msra.mxu1 %v4132_v21 }
 0xb0f   : > { %v2841_v25 = vrot.slane %v2827_v19, %v5468_v15  ;;  %v2857_v44 = vrot.slane %v2843_v20, %v5468_v15  ;;  %v2834_v26 = vrot.slane %v2826_v23, %v5468_v15  ;;  %v2850_v1 = vrot.slane %v2842_v45, %v5468_v15  ;;  %3907 = vmatprep.subr.bf16.mxu1 %v4686_v32  ;;  %v3710_v45 = vld [vmem:[%s5733_s24] ss:$0 sm:$0xff] }
 0xb11   : > { %v2860_v29 = vcombine.low %v2841_v25, %v2857_v44  ;;  %v2859_v31 = vcombine.high %v2834_v26, %v2850_v1  ;;  %v2858_v34 = vcombine.low %v2834_v26, %v2850_v1  ;;  %v2861_v38 = vcombine.high %v2841_v25, %v2857_v44 }
 0xb12   : > { %3908 = vmatpush3.bf16.msra.mxu1 %v4133_v22 }
 0xb13   : > { %v4118_v35 = vpack.i.bf16 %v2860_v29, %v2001_v27  ;;  %v4113_v36 = vpack.i.bf16 %v2859_v31, %v2000_v30  ;;  %v4123_v40 = vpack.i.bf16 %v2861_v38, %v2002_v39  ;;  %v3711_v27 = vld [vmem:[%s5734_s26] ss:$0 sm:$0xff]  ;;  %v4136_v38 = vld [vmem:[%s5267_s4 + $0x10] sm:$0xff]   ;;  %v4137_v39 = vld [vmem:[%s5267_s4 + $0x18] sm:$0xff]  }
 0xb15   : > { %4119 = vrot.lane.b32.xlu0 %v4118_v35, %s4695_s28  ;;  %4114 = vrot.lane.b32.xlu1 %v4113_v36, %s4696_s29  ;;  %v4134_v35 = vld [vmem:[%s5267_s4] sm:$0xff]   ;;  %v4135_v36 = vld [vmem:[%s5267_s4 + $0x8] sm:$0xff]   ;;  %s5736_s4 = scalar_lea.vmem [#allocation16], %s5229_s30 }
 0xb19   : > { %4124 = vrot.lane.b32.xlu1 %v4123_v40, %s4697_s2  ;;  %v3712_v40 = vld [vmem:[%s5735_s21] ss:$0 sm:$0xff]  ;;  %s5742_s2 = sld [smem:[#allocation47_spill]] (!%p3724_p0) }
 0xb87   : > { %v4120_v15 = vpop.permute.xlu0 %4119  ;;  %v4115_v28 = vpop.permute.xlu1 %4114 }
 0xb88   : > { %v4117_v24 = vunpack.i.h.bf16 %v4115_v28  ;;  %v4116_v41 = vunpack.i.l.bf16 %v4115_v28  ;;  %v4122_v42 = vunpack.i.h.bf16 %v4120_v15  ;;  %v4121_v48 = vunpack.i.l.bf16 %v4120_v15 }
 0xb8a   : > { %v2015_v37 = vsel %vm1245_vm4, %v1999_v49, %v4116_v41  ;;  %v2874_v50 = vsel %vm1245_vm4, %v2858_v34, %v4117_v24 }
 0xb8b   : > { %v4125_v51 = vpop.permute.xlu1 %4124  ;;  %v2017_v53 = vsel %vm2016_vm5, %v2015_v37, %v4121_v48  ;;  %v2875_v54 = vsel %vm2016_vm5, %v2874_v50, %v4122_v42 }
 0xb8c   : > { %v4127_v52 = vunpack.i.h.bf16 %v4125_v51  ;;  %v4126_v47 = vunpack.i.l.bf16 %v4125_v51 }
 0xb8e   : > { %v2019_v46 = vsel %vm2018_vm6, %v2017_v53, %v4126_v47  ;;  %v2876_v55 = vsel %vm2018_vm6, %v2875_v54, %v4127_v52 }
 0xb8f   : > { %v2877_v56 = vpack.c.bf16 %v2876_v55, %v2019_v46 }
 0xb91   : > { %3902 = vmatmul.mubr.msk.bf16.vlgmr.msra.gmra.mrb[28].mxu0 %vm1108_vm2, %v2877_v56 }
 0xb92   : > { %3921 = vmatprep.mubr.msk.bf16.mxu0 %vm4687_vm1, %v4686_v32  ;;  %3914 = vmatpush3.bf16.msra.mxu0 %v4134_v35 }
 0xb93   : > { %3915 = vmatprep.subr.bf16.mxu0 %v4686_v32 }
 0xb96   : > { %3916 = vmatpush3.bf16.msra.mxu0 %v4135_v36 }
 0xb97   : > { %3917 = vmatprep.subr.bf16.mxu0 %v4686_v32 }
 0xb9a   : > { %3918 = vmatpush3.bf16.msra.mxu0 %v4136_v38 }
 0xb9b   : > { %3919 = vmatprep.subr.bf16.mxu0 %v4686_v32 }
 0xb9e   : > { %3920 = vmatpush3.bf16.msra.mxu0 %v4137_v39  ;;  %v4184_v39 = vld [vmem:[%s5740_s6] sm:$0xff] (!%p3724_p0)  }
 0xc64   : > { %v2938_v43 = vpop.f32.mrb[28].mxu0 }
 0xc65   : > { %v2939_v49 = vadd.f32 %v3706_v33, %v2938_v43  ;;  %v3903_v57 = vpop.f32.mrb[29].mxu0 }
 0xc66   : > { %v2941_v58 = vpop.f32.mrb[30].mxu0 }
 0xc67   : > { %v2942_v59 = vadd.f32 %v3706_v33, %v2941_v58  ;;  %v3904_v60 = vpop.f32.mrb[31].mxu0  ;;  %v2945_v62 = vadd.f32 %v4182_v61, %v2939_v49 }
 0xc69   : > { %v2949_v63 = vsel %vm1108_vm2, %v2945_v62, 0.0  ;;  %v2946_v2 = vadd.f32 %v4183_v0, %v2942_v59 }
 0xc6a   : > { %2950 = vadd.xlane.f32.xlu1 %v2949_v63 }
 0xc6b   : > { %v2952_v3 = vsel %vm1108_vm2, %v2946_v2, 0.0 }
 0xc6c   : > { %2953 = vadd.xlane.f32.xlu0 %v2952_v3 }
 0xcf7   : > { %v2951_v4 = vpop.xlane.xlu1 %2950 }
 0xcf8   : > { %v2956_v5 = vmul.f32 0.03125, %v2951_v4 }
 0xcf9   : > { %v2954_v6 = vpop.xlane.xlu0 %2953 }
 0xcfa   : > { %v2958_v7 = vsub.f32 %v2945_v62, %v2956_v5  ;;  %v2957_v8 = vmul.f32 0.03125, %v2954_v6  ;;  %v3716_v62 = vld [vmem:[%s5736_s4] ss:$0 sm:$0xff] }
 0xcfc   : > { %v2959_v9 = vsub.f32 %v2946_v2, %v2957_v8  ;;  %v2960_v10 = vmul.f32 %v2958_v7, %v2958_v7 }
 0xcfe   : > { %v2962_v11 = vsel %vm1108_vm2, %v2960_v10, 0.0  ;;  %v2961_v12 = vmul.f32 %v2959_v9, %v2959_v9 }
 0xcff   : > { %2963 = vadd.xlane.f32.xlu1 %v2962_v11 }
 0xd00   : > { %v2965_v13 = vsel %vm1108_vm2, %v2961_v12, 0.0 }
 0xd01   : > { %2966 = vadd.xlane.f32.xlu0 %v2965_v13 }
 0xd8c   : > { %v2964_v14 = vpop.xlane.xlu1 %2963 }
 0xd8d   : > { %v2968_v16 = vmul.f32 0.03125, %v2964_v14 }
 0xd8e   : > { %v2967_v17 = vpop.xlane.xlu0 %2966 }
 0xd8f   : > { %v2970_v18 = vadd.f32 1e-07, %v2968_v16  ;;  %v2969_v19 = vmul.f32 0.03125, %v2967_v17 }
 0xd91   : > { %4170 = vrsqrt.f32 %v2970_v18  ;;  %v2971_v20 = vadd.f32 1e-07, %v2969_v19 }
 0xd93   : > { %4172 = vrsqrt.f32 %v2971_v20 }
 0xd9b   : > { %v4171_v23 = vpop.eup %4170 }
 0xd9c   : > { %v2974_v25 = vmul.f32 %v4171_v23, %v2958_v7 }
 0xd9d   : > { %v4173_v44 = vpop.eup %4172 }
 0xd9e   : > { %v2982_v26 = vmul.f32 %v3710_v45, %v2974_v25  ;;  %v2975_v1 = vmul.f32 %v4173_v44, %v2959_v9 }
 0xda0   : > { %v2983_v29 = vmul.f32 %v3710_v45, %v2975_v1  ;;  %v2990_v30 = vadd.f32 %v3711_v27, %v2982_v26  ;;  %v3722_v1 = vld [vmem:[%s5737_s12] ss:$0 sm:$0xff] }
 0xda2   : > { %v2991_v31 = vadd.f32 %v3711_v27, %v2983_v29 }
 0xda4   : > { %v2992_v34 = vpack.c.bf16 %v2991_v31, %v2990_v30 }
 0xda6   : > { %3910 = vmatmul.mubr.msk.bf16.vlgmr.msra.gmra.mrb[40].mxu1 %vm1108_vm2, %v2992_v34 }
 0xe79   : > { %v3053_v15 = vpop.f32.mrb[40].mxu1 }
 0xe7a   : > { %v3054_v28 = vadd.f32 %v3712_v40, %v3053_v15  ;;  %v3911_v24 = vpop.f32.mrb[41].mxu1  ;;  %v4185_v15 = vld [vmem:[%s5740_s6 + $0x8] sm:$0xff] (!%p3724_p0)  }
 0xe7b   : > { %v3056_v41 = vpop.f32.mrb[42].mxu1 }
 0xe7c   : > { %v3060_v42 = vmul.f32 %v3054_v28, %v3054_v28  ;;  %v3057_v48 = vadd.f32 %v3712_v40, %v3056_v41  ;;  %v3912_v37 = vpop.f32.mrb[43].mxu1  ;;  %v4698_v40 = vmov (!%p3724_p0), 0.0  }
 0xe7d   : > { %3925 = vmatprep.subr.bf16.mxu0 (!%p3724_p0), %v4698_v40  ;;  %3933 = vmatprep.subr.bf16.mxu1 (!%p3724_p0), %v4698_v40 }
 0xe7e   : > { %v3062_v50 = vmul.f32 %v3060_v42, %v3054_v28  ;;  %v3061_v51 = vmul.f32 %v3057_v48, %v3057_v48  ;;  %3937 = vmatprep.mubr.msk.bf16.mxu1 (!%p3724_p0), %vm4699_vm8, %v4698_v40 }
 0xe80   : > { %v3064_v52 = vmul.f32 0.044715, %v3062_v50  ;;  %v3063_v47 = vmul.f32 %v3061_v51, %v3057_v48 }
 0xe82   : > { %v3066_v53 = vadd.f32 %v3064_v52, %v3054_v28  ;;  %v3065_v54 = vmul.f32 0.044715, %v3063_v47  ;;  %v4186_v47 = vld [vmem:[%s5741_s16] sm:$0xff] (!%p3724_p0)  }
 0xe83   : > { %3934 = vmatpush3.bf16.msra.mxu1 (!%p3724_p0), %v4186_v47 }
 0xe84   : > { %v3068_v46 = vmul.f32 0.7978846, %v3066_v53  ;;  %v3067_v32 = vadd.f32 %v3065_v54, %v3057_v48  ;;  %3935 = vmatprep.subr.bf16.mxu1 (!%p3724_p0), %v4698_v40  ;;  %v4187_v53 = vld [vmem:[%s5741_s16 + $0x8] sm:$0xff] (!%p3724_p0)   ;;  %v3725_v54 = vld [vmem:[#allocation19] ss:$0 sm:$0xff] (!%p3724_p0) }
 0xe86   : > { %4174 = vtanh.f32 %v3068_v46  ;;  %v3069_v55 = vmul.f32 0.7978846, %v3067_v32 }
 0xe87   : > { %3936 = vmatpush3.bf16.msra.mxu1 (!%p3724_p0), %v4187_v53 }
 0xe88   : > { %4176 = vtanh.f32 %v3069_v55 }
 0xe90   : > { %v4175_v56 = vpop.eup %4174 }
 0xe91   : > { %v3072_v33 = vadd.f32 1.0, %v4175_v56 }
 0xe92   : > { %v4177_v43 = vpop.eup %4176 }
 0xe93   : > { %v3074_v49 = vmul.f32 0.5, %v3072_v33  ;;  %v3073_v57 = vadd.f32 1.0, %v4177_v43 }
 0xe95   : > { %v3075_v58 = vmul.f32 0.5, %v3073_v57  ;;  %v3076_v59 = vmul.f32 %v3074_v49, %v3054_v28  ;;  %v3729_v57 = vld [vmem:[%s5742_s2] ss:$0 sm:$0xff] (!%p3724_p0) }
 0xe97   : > { %v3077_v60 = vmul.f32 %v3075_v58, %v3057_v48 }
 0xe99   : > { %v3078_v61 = vpack.c.bf16 %v3077_v60, %v3076_v59 }
 0xe9b   : > { %3922 = vmatmul.mubr.msk.bf16.vlgmr.msra.gmra.mrb[32].mxu0 %vm3118_vm7, %v3078_v61 }
 0xe9c   : > { %3926 = vmatpush3.bf16.msra.mxu0 (!%p3724_p0), %v4184_v39  ;;  %3929 = vmatprep.mubr.msk.bf16.mxu0 (!%p3724_p0), %vm4699_vm8, %v4698_v40 }
 0xe9d   : > { %3927 = vmatprep.subr.bf16.mxu0 (!%p3724_p0), %v4698_v40 }
 0xea0   : > { %3928 = vmatpush3.bf16.msra.mxu0 (!%p3724_p0), %v4185_v15 }
 0xf6e   : > { %v3156_v63 = vpop.f32.mrb[32].mxu0 }
 0xf6f   : > { %v3157_v0 = vadd.f32 %v3716_v62, %v3156_v63  ;;  %v3923_v2 = vpop.f32.mrb[33].mxu0 }
 0xf70   : > { %v3159_v3 = vpop.f32.mrb[34].mxu0 }
 0xf71   : > { %v3160_v4 = vadd.f32 %v3716_v62, %v3159_v3  ;;  %v3924_v5 = vpop.f32.mrb[35].mxu0  ;;  %v3163_v6 = vadd.f32 %v3157_v0, %v2990_v30  ;;  %v3723_v30 = vld [vmem:[%s5738_s1] ss:$0 sm:$0xff] }
 0xf73   : > { %v3167_v7 = vsel %vm1108_vm2, %v3163_v6, 0.0  ;;  %v3164_v8 = vadd.f32 %v3160_v4, %v2991_v31 }
 0xf74   : > { %3168 = vadd.xlane.f32.xlu1 %v3167_v7 }
 0xf75   : > { %v3170_v9 = vsel %vm1108_vm2, %v3164_v8, 0.0 }
 0xf76   : > { %3171 = vadd.xlane.f32.xlu0 %v3170_v9 }
0x1001   : > { %v3169_v10 = vpop.xlane.xlu1 %3168 }
0x1002   : > { %v3173_v11 = vmul.f32 0.03125, %v3169_v10 }
0x1003   : > { %v3172_v12 = vpop.xlane.xlu0 %3171 }
0x1004   : > { %v3175_v13 = vsub.f32 %v3163_v6, %v3173_v11  ;;  %v3174_v21 = vmul.f32 0.03125, %v3172_v12 }
0x1006   : > { %v3176_v22 = vsub.f32 %v3164_v8, %v3174_v21  ;;  %v3177_v14 = vmul.f32 %v3175_v13, %v3175_v13 }
0x1008   : > { %v3179_v16 = vsel %vm1108_vm2, %v3177_v14, 0.0  ;;  %v3178_v17 = vmul.f32 %v3176_v22, %v3176_v22 }
0x1009   : > { %3180 = vadd.xlane.f32.xlu1 %v3179_v16 }
0x100a   : > { %v3182_v18 = vsel %vm1108_vm2, %v3178_v17, 0.0 }
0x100b   : > { %3183 = vadd.xlane.f32.xlu0 %v3182_v18 }
0x1096   : > { %v3181_v19 = vpop.xlane.xlu1 %3180 }
0x1097   : > { %v3185_v20 = vmul.f32 0.03125, %v3181_v19 }
0x1098   : > { %v3184_v23 = vpop.xlane.xlu0 %3183 }
0x1099   : > { %v3187_v45 = vadd.f32 1e-07, %v3185_v20  ;;  %v3186_v25 = vmul.f32 0.03125, %v3184_v23 }
0x109b   : > { %4178 = vrsqrt.f32 %v3187_v45  ;;  %v3188_v44 = vadd.f32 1e-07, %v3186_v25 }
0x109d   : > { %4180 = vrsqrt.f32 %v3188_v44 }
0x10a5   : > { %v4179_v26 = vpop.eup %4178 }
0x10a6   : > { %v3191_v27 = vmul.f32 %v4179_v26, %v3175_v13 }
0x10a7   : > { %v4181_v29 = vpop.eup %4180 }
0x10a8   : > { %v3199_v31 = vmul.f32 %v3722_v1, %v3191_v27  ;;  %v3192_v34 = vmul.f32 %v4181_v29, %v3176_v22  ;;  %3214 = sbr.rel (%p3724_p0) target bundleno = 4729 (0x1279), region = 160 }
0x10aa   : > { %v3207_v35 = vadd.f32 %v3723_v30, %v3199_v31  ;;  %v3200_v36 = vmul.f32 %v3722_v1, %v3192_v34 }
0x10ac   : > { %3209 = vst.msk [vmem:[#allocation2] sm:$0xff] %vm1108_vm2, %v3207_v35  ;;  %v3208_v38 = vadd.f32 %v3723_v30, %v3200_v36 }
0x10ae   : > { %3210 = vst.msk [vmem:[#allocation2 + $0x8] sm:$0xff] %vm1108_vm2, %v3208_v38 }
0x10b3   : > { %v3215_v28 = vld [vmem:[#allocation2] sm:$0x1] }
0x10b4   : > { %v3217_v41 = vpack.c.bf16 %v3215_v28, %v3215_v28 }
0x10b5   : > { %v3216_v24 = vld [vmem:[#allocation2 + $0x8] sm:$0x1] }
0x10b6   : > { %v3218_v42 = vpack.c.bf16 %v3216_v24, %v3216_v24  ;;  %v3232_v48 = vunpack.c.l.b16 %v3217_v41 }
0x10b8   : > { %v3233_v37 = vunpack.c.l.b16 %v3218_v42 }
0x10ba   : > { %v3234_v50 = vrot.slane %v3233_v37, 7 }
0x10bc   : > { %v3236_v51 = vsel %vm3235_vm9, %v3234_v50, %v3232_v48 }
0x10bd   : > { %v3237_v52 = vpack.c.b16 %v3236_v51, %v3236_v51 }
0x10bf   : > { %3930 = vmatmul.mubr.msk.bf16.vlgmr.msra.gmra.mrb[0].mxu0 %vm1108_vm2, %v3237_v52 }
0x1192   : > { %v3287_v46 = vpop.f32.mrb[0].mxu0 }
0x1193   : > { %v3288_v32 = vadd.f32 %v3725_v54, %v3287_v46  ;;  %v3931_v55 = vpop.f32.mrb[1].mxu0 }
0x1194   : > { %v3290_v56 = vpop.f32.mrb[2].mxu0 }
0x1195   : > { %4188 = vtanh.f32 %v3288_v32  ;;  %v3932_v33 = vpop.f32.mrb[3].mxu0 }
0x119f   : > { %v4189_v43 = vpop.eup %4188 }
0x11a0   : > { %v3294_v49 = vpack.c.bf16 %v4189_v43, %v4189_v43 }
0x11a2   : > { %3938 = vmatmul.mubr.msk.bf16.vlgmr.msra.gmra.mrb[0].mxu1 %vm1108_vm2, %v3294_v49 }
0x1275   : > { %v3355_v58 = vpop.f32.mrb[0].mxu1 }
0x1276   : > { %v3356_v59 = vadd.f32 %v3729_v57, %v3355_v58  ;;  %v3939_v60 = vpop.f32.mrb[1].mxu1 }
0x1277   : > { %v3358_v61 = vpop.f32.mrb[2].mxu1 }
0x1278   : > { %3361 = vst [vmem:[#allocation20] sm:$0x3] %v3356_v59  ;;  %v3940_v62 = vpop.f32.mrb[3].mxu1 }
0x1279 PF: > { %p4033_p10 = scmp.eq.s32.totalorder %s4835_s3, 1  ;;  %s4700_s7 = smov [#allocation20]  }
0x127a   : > { %s3371_s24 = sshll.u32 %s4700_s7, 4  ;;  %s3372_s24 = int_to_ptr.vmem [resolvable:$true] %s3371_s24 }
0x127b   : > { %s4570_s26 = scalar_lea.vmem %s3372_s24, 32  ;;  %p4577_p8 = scmp.lt.s32.totalorder %s3372_s24, %s3372_s24 }
0x127c   : > { %p4571_p12 = scmp.ne.s32.totalorder %s3372_s24, %s4570_s26  ;;  %p4578_p1 = scmp.lt.s32.totalorder %s4570_s26, %s4570_s26 }
0x127e   : > { %p4572_p11 = pnand %p4571_p12, %p4033_p10  ;;  %p4579_p7 = por %p4578_p1, %p4577_p8 }
0x1280   : > { %p4573_p5 = pneg %p4572_p11 }
0x1282   : > { %p4580_p9 = pnand %p4579_p7, %p4573_p5 }
0x1284   : > { %4583 = shalt.err (!%p4580_p9)
}
0x1285   : > { %s5743_s12 = sld [smem:[#allocation48_spill]] }
0x128b   : > { %s4584_s1 = scalar_lea.hbm %s5743_s12, 32 }
0x128c   : > { %p4585_p3 = scmp.ne.s32.totalorder %s5743_s12, %s4584_s1  ;;  %p4590_p2 = scmp.lt.u32.totalorder %s4584_s1, %s5743_s12 }
0x128e   : > { %p4586_p4 = pnand %p4585_p3, %p4033_p10 }
0x1290   : > { %p4587_p13 = pneg %p4586_p4 }
0x1292   : > { %p4592_p6 = pnand %p4590_p2, %p4587_p13 }
0x1294   : > { %4595 = shalt.err (!%p4592_p6)
}
0x1295   : > { %3978 = dma.vmem_to_hbm [thread:$0]  (%p4033_p10), %s3372_s24, 32, %s5743_s12, [#allocation5]  }
0x1296   : > { %4641 = dma.done.wait (%p4033_p10), [#allocation5], 32  }
0x1297   : > { %4643 = vsyncadd (%p4033_p10), [#allocation5], 4294967264 }
0x1298 PF: > { %s5744_s8 = sld [smem:[#allocation30_spill]]  ;;  %s5745_s23 = sld [smem:[#allocation27_spill]] }
0x1299   : > { %s5746_s28 = sld [smem:[#allocation33_spill]]  ;;  %s5747_s24 = sld [smem:[#allocation29_spill]] }
0x129a   : > { %s5748_s2 = sld [smem:[#allocation32_spill]]  ;;  %s5749_s1 = smov %s4650_s22 }
0x129e   : > { %s34_s25 = sadd.s32 1, %s5744_s8   ;;  %s5750_s22 = smov %s5745_s23 }
0x129f   : > { %p31_p0 = scmp.ge.s32.totalorder %s34_s25, 4   ;;  %s5751_s23 = smov %s5746_s28 }
0x12a1   :  { %33 = sbr.rel (!%p31_p0) target bundleno = 22 (0x16), region = 256 }
0x12a8   :  { %3384 = vsyncpa [#allocation4], 1 }
0x12a9   :  { %3386 = vsyncpa [#allocation4 + $0x1], 1 }
0x12aa   :  { %3387 = vsyncpa [#allocation7], 1 }
0x12ab   :  { %3388 = vsyncpa [#allocation10], 1 }
0x12ac   :  { %3389 = vsyncpa [#allocation5], 1 }
0x12ad   :  { %3391 = vsyncpa [#allocation5 + $0x1], 1 }

</bundles_post_ra>
